<compile_context>
chip_gen: v5e
topology: v5e:2x2
jax: 0.10.0
libtpu: 0.0.40
codegen_flags: <defaults>
</compile_context>

<pallas_src>
import math

import jax
import jax.numpy as jnp
from jax.experimental import pallas as pl
from jax.experimental.pallas import tpu as pltpu


def _round_up(x, m):
    return ((x + m - 1) // m) * m


# ----------------------------------------------------------------------------- #
# One-time parameter prep (outside the hot path).
# ----------------------------------------------------------------------------- #
def prepare_params(params):
    f32 = jnp.float32
    E = params["ws_s2"].shape[1]
    # block-diagonal layer-2 weight: columns = [user_src | user_nei | item_src | item_nei]
    blocks = [params["ws_s2"], params["wn_s2"], params["ws_d2"], params["wn_d2"]]
    K = sum(int(w.shape[0]) for w in blocks)
    w2blk = jnp.zeros((K, 4 * E), f32)
    r = 0
    for c, w in enumerate(blocks):
        rr = int(w.shape[0])
        w2blk = w2blk.at[r:r + rr, c * E:(c + 1) * E].set(w.astype(f32))
        r += rr
    return dict(
        ws_s1=params["ws_s1"].astype(f32),
        wn_s1=params["wn_s1"].astype(f32),
        ws_d1=params["ws_d1"].astype(f32),
        wn_d1=params["wn_d1"].astype(f32),
        w2blk=w2blk,
        w1t=params["w1"].T.astype(f32),
        b1=params["b1"].reshape(1, -1).astype(f32),
        w2t=params["w2"].T.astype(f32),
        b2=params["b2"].reshape(1, -1).astype(f32),
    )


# ----------------------------------------------------------------------------- #
# Pallas kernel: one batch block of the full Encoder forward.
# ----------------------------------------------------------------------------- #
def make_encoder_kernel(n1, n2, Ds, Dd):
    inv_n1 = 1.0 / float(n1)
    inv_n2 = 1.0 / float(n2)

    def kernel(edge_ref, src_ref, dst_ref, sh1_ref, dh1_ref, sh2_ref, dh2_ref,
               ws_s1_ref, wn_s1_ref, ws_d1_ref, wn_d1_ref, w2blk_ref,
               w1t_ref, b1_ref, w2t_ref, b2_ref, out_ref):
        Bb = src_ref.shape[0]
        relu = lambda x: jnp.maximum(x, 0.0)
        mm = lambda a, b: jnp.dot(a, b, preferred_element_type=jnp.float32)

        # ---- independent work first: Edge_Encoder MLP --------------------------
        edge_h = relu(mm(edge_ref[...], w1t_ref[...]) + b1_ref[...])
        edge_emb = mm(edge_h, w2t_ref[...]) + b2_ref[...]              # (Bb, 8)

        # ---- neighbor means on the original (B, n1[, n2], D) layout ------------
        # (n1/n2 are tiny compile-time constants -> unrolled VPU adds; if they
        #  grow, switch to lax.fori_loop(..., unroll=True) or a grid axis)
        sh1 = sh1_ref[...]                                             # (Bb, n1, Dd+De)
        dh1 = dh1_ref[...]                                             # (Bb, n1, Ds+De)
        sh2 = sh2_ref[...]                                             # (Bb, n1, n2, Ds+De)
        dh2 = dh2_ref[...]                                             # (Bb, n1, n2, Dd+De)

        def hop2_mean(h2, j):
            acc = h2[:, j, 0, :]
            for k in range(1, n2):
                acc = acc + h2[:, j, k, :]
            return acc * inv_n2

        h2m_s = [hop2_mean(sh2, j) for j in range(n1)]                 # (Bb, Ds+De) each
        h2m_d = [hop2_mean(dh2, j) for j in range(n1)]                 # (Bb, Dd+De) each

        def mean_of(parts):
            acc = parts[0]
            for p in parts[1:]:
                acc = acc + p
            return acc * (1.0 / len(parts))

        h1m_s = mean_of([sh1[:, j, :] for j in range(n1)])             # (Bb, Dd+De)
        h1m_d = mean_of([dh1[:, j, :] for j in range(n1)])             # (Bb, Ds+De)

        # ---- layer-1: 4 shared-RHS row-stacked matmuls (was 8 tiny ones) -------
        lhs_a = jnp.concatenate([src_ref[...]] + [dh1[:, j, :Ds] for j in range(n1)], axis=0)
        lhs_b = jnp.concatenate([dst_ref[...]] + [sh1[:, j, :Dd] for j in range(n1)], axis=0)
        lhs_c = jnp.concatenate([h1m_s] + h2m_d, axis=0)
        lhs_d = jnp.concatenate([h1m_d] + h2m_s, axis=0)

        res_a = relu(mm(lhs_a, ws_s1_ref[...]))                        # ((1+n1)Bb, Hs)
        res_b = relu(mm(lhs_b, ws_d1_ref[...]))                        # ((1+n1)Bb, Hd)
        res_c = relu(mm(lhs_c, wn_s1_ref[...]))                        # ((1+n1)Bb, Hs)
        res_d = relu(mm(lhs_d, wn_d1_ref[...]))                        # ((1+n1)Bb, Hd)

        def head_and_tail_mean(res):
            head = res[:Bb, :]
            acc = res[Bb:2 * Bb, :]
            for j in range(1, n1):
                acc = acc + res[(1 + j) * Bb:(2 + j) * Bb, :]
            return head, acc * inv_n1

        a_src, m1_d = head_and_tail_mean(res_a)      # relu(src@ws_s1), mean relu(dh1[:, :Ds]@ws_s1)
        a_dst, m1_s = head_and_tail_mean(res_b)      # relu(dst@ws_d1), mean relu(sh1[:, :Dd]@ws_d1)
        a_nei_s, m2_d = head_and_tail_mean(res_c)    # relu(h1m_s@wn_s1), mean relu(h2m_d@wn_s1)
        a_nei_d, m2_s = head_and_tail_mean(res_d)    # relu(h1m_d@wn_d1), mean relu(h2m_s@wn_d1)

        # ---- layer-2: ONE block-diagonal matmul (was 8) -------------------------
        lhs2 = jnp.concatenate(
            [a_src, a_nei_s, m1_s, m2_s, a_dst, a_nei_d, m1_d, m2_d], axis=1)
        fused = relu(mm(lhs2, w2blk_ref[...]))                         # (Bb, 4E) = user|item

        # single store, 2-piece concat (was 5)
        out_ref[...] = jnp.concatenate([fused, edge_emb], axis=1)

    return kernel


# ----------------------------------------------------------------------------- #
# Wrapper: batch-gridded pallas_call, no wrapper-side transposes of the hops.
# ----------------------------------------------------------------------------- #
def encoder_forward(prep, edge_feats, src_feats, src_hop1, src_hop2,
                    dst_feats, dst_hop1, dst_hop2, block_b=None):
    f32 = jnp.float32
    B, Ds = src_feats.shape
    Dd = dst_feats.shape[1]
    De = edge_feats.shape[1]
    n1 = src_hop1.shape[1]
    n2 = src_hop2.shape[2]
    E4 = prep["w2blk"].shape[1]
    out_dim = E4 + prep["b2"].shape[1]

    # Batch tile: multiple of 8. Size against per-step VMEM (2x double-buffered
    # activations); ~128 rows is a good default on v5e/v6e, halve on v7x (64 MiB).
    if block_b is None:
        block_b = min(128, _round_up(B, 8))
    block_b = max(8, _round_up(block_b, 8))
    Bp = _round_up(B, block_b)
    grid = (Bp // block_b,)

    def padb(x):
        x = x.astype(f32)
        if Bp == B:
            return x
        pads = [(0, Bp - B)] + [(0, 0)] * (x.ndim - 1)
        return jnp.pad(x, pads)

    edge = padb(edge_feats)
    src = padb(src_feats)
    dst = padb(dst_feats)
    sh1 = padb(src_hop1)
    dh1 = padb(dst_hop1)
    sh2 = padb(src_hop2)
    dh2 = padb(dst_hop2)

    Dh1s = sh1.shape[-1]
    Dh1d = dh1.shape[-1]
    Dh2s = sh2.shape[-1]
    Dh2d = dh2.shape[-1]

    act_specs = [
        pl.BlockSpec((block_b, De), lambda i: (i, 0)),
        pl.BlockSpec((block_b, Ds), lambda i: (i, 0)),
        pl.BlockSpec((block_b, Dd), lambda i: (i, 0)),
        pl.BlockSpec((block_b, n1, Dh1s), lambda i: (i, 0, 0)),
        pl.BlockSpec((block_b, n1, Dh1d), lambda i: (i, 0, 0)),
        pl.BlockSpec((block_b, n1, n2, Dh2s), lambda i: (i, 0, 0, 0)),
        pl.BlockSpec((block_b, n1, n2, Dh2d), lambda i: (i, 0, 0, 0)),
    ]
    w_order = ["ws_s1", "wn_s1", "ws_d1", "wn_d1", "w2blk", "w1t", "b1", "w2t", "b2"]
    w_args = [prep[k] for k in w_order]
    w_specs = [pl.BlockSpec(w.shape, lambda i: (0, 0)) for w in w_args]  # weights resident

    # advisory cost hint so XLA schedules the hop-tensor producers around the kernel
    Hs = prep["ws_s1"].shape[1]
    Hd = prep["ws_d1"].shape[1]
    flops = 2 * Bp * ((1 + n1) * (Ds * Hs + Dd * Hd + Dh1s * Hs + Dh1d * Hd)
                      + prep["w2blk"].shape[0] * E4
                      + De * prep["w1t"].shape[1]
                      + prep["w2t"].shape[0] * prep["w2t"].shape[1])
    bytes_in = 4 * (sum(int(x.size) for x in (edge, src, dst, sh1, dh1, sh2, dh2))
                    + sum(int(w.size) for w in w_args))
    bytes_out = 4 * Bp * out_dim

    kernel = make_encoder_kernel(n1, n2, Ds, Dd)
    out = pl.pallas_call(
        kernel,
        out_shape=jax.ShapeDtypeStruct((Bp, out_dim), f32),
        grid=grid,
        in_specs=act_specs + w_specs,
        out_specs=pl.BlockSpec((block_b, out_dim), lambda i: (i, 0)),
        compiler_params=pltpu.CompilerParams(dimension_semantics=("parallel",)),
        cost_estimate=pl.CostEstimate(flops=int(flops), transcendentals=0,
                                      bytes_accessed=int(bytes_in + bytes_out)),
    )(edge, src, dst, sh1, dh1, sh2, dh2, *w_args)
    return out[:B] if Bp != B else out


# ----------------------------------------------------------------------------- #
# Pure-JAX reference (mirrors the PyTorch forward, eval-mode dropout).
# ----------------------------------------------------------------------------- #
def reference_forward(params, edge_feats, src_feats, src_hop1, src_hop2,
                      dst_feats, dst_hop1, dst_hop2):
    Ds = src_feats.shape[1]
    Dd = dst_feats.shape[1]

    def sage(src, nei, w_src, w_nei):
        return jax.nn.relu(jnp.concatenate([src @ w_src, nei @ w_nei], axis=-1))

    src_hop1_mean = src_hop1.mean(axis=1)
    dst_hop1_mean = dst_hop1.mean(axis=1)
    src_feats_agg1 = sage(src_feats, src_hop1_mean, params["ws_s1"], params["wn_s1"])
    dst_feats_agg1 = sage(dst_feats, dst_hop1_mean, params["ws_d1"], params["wn_d1"])

    src_hop2_mean = src_hop2.mean(axis=2)
    dst_hop2_mean = dst_hop2.mean(axis=2)
    src_hop1_agg1 = sage(src_hop1[:, :, :Dd], src_hop2_mean, params["ws_d1"], params["wn_d1"])
    dst_hop1_agg1 = sage(dst_hop1[:, :, :Ds], dst_hop2_mean, params["ws_s1"], params["wn_s1"])

    src_agg1_mean = src_hop1_agg1.mean(axis=1)
    dst_agg1_mean = dst_hop1_agg1.mean(axis=1)

    user = sage(src_feats_agg1, src_agg1_mean, params["ws_s2"], params["wn_s2"])
    item = sage(dst_feats_agg1, dst_agg1_mean, params["ws_d2"], params["wn_d2"])

    h = jax.nn.relu(edge_feats @ params["w1"].T + params["b1"])
    edge_emb = h @ params["w2"].T + params["b2"]
    return jnp.concatenate([user, item, edge_emb], axis=1)


# ----------------------------------------------------------------------------- #
# Deterministic parameter init (kaiming-uniform-like, synthetic).
# ----------------------------------------------------------------------------- #
def init_params(key, Ds, Dd, De, Hs, Hd, E):
    ks = jax.random.split(key, 12)

    def ku(k, shape):
        bound = math.sqrt(6.0 / shape[0])
        return jax.random.uniform(k, shape, jnp.float32, -bound, bound)

    return dict(
        ws_s1=ku(ks[0], (Ds, Hs)),          wn_s1=ku(ks[1], (Dd + De, Hs)),
        ws_d1=ku(ks[2], (Dd, Hd)),          wn_d1=ku(ks[3], (Ds + De, Hd)),
        ws_s2=ku(ks[4], (2 * Hs, E)),       wn_s2=ku(ks[5], (2 * Hd, E)),
        ws_d2=ku(ks[6], (2 * Hd, E)),       wn_d2=ku(ks[7], (2 * Hs, E)),
        w1=ku(ks[8], (6, De)),              b1=jax.random.uniform(ks[9], (6,), jnp.float32, -0.4, 0.4),
        w2=ku(ks[10], (8, 6)),              b2=jax.random.uniform(ks[11], (8,), jnp.float32, -0.4, 0.4),
    )


if __name__ == "__main__":
    # Small synthetic config (args): src_dim=5, dst_dim=6, edge_dim=4,
    # src_hidden_dim1=8, dst_hidden_dim1=6, embed_dim=16.
    B, n1, n2 = 16, 3, 2
    Ds, Dd, De = 5, 6, 4
    Hs, Hd, E = 8, 6, 16

    key = jax.random.PRNGKey(0)
    k_param, k0, k1, k2, k3, k4, k5, k6 = jax.random.split(key, 8)

    params = init_params(k_param, Ds, Dd, De, Hs, Hd, E)
    prep = prepare_params(params)            # done once, outside the hot path

    edge_feats = jax.random.normal(k0, (B, De), jnp.float32)
    src_feats = jax.random.normal(k1, (B, Ds), jnp.float32)
    src_hop1_feats = jax.random.normal(k2, (B, n1, Dd + De), jnp.float32)
    src_hop2_feats = jax.random.normal(k3, (B, n1, n2, Ds + De), jnp.float32)
    dst_feats = jax.random.normal(k4, (B, Dd), jnp.float32)
    dst_hop1_feats = jax.random.normal(k5, (B, n1, Ds + De), jnp.float32)
    dst_hop2_feats = jax.random.normal(k6, (B, n1, n2, Dd + De), jnp.float32)

    out = encoder_forward(prep, edge_feats, src_feats, src_hop1_feats,
                          src_hop2_feats, dst_feats, dst_hop1_feats,
                          dst_hop2_feats, block_b=8)   # grid=(2,), exercises the batch grid
    out = jax.block_until_ready(out)

    ref = reference_forward(params, edge_feats, src_feats, src_hop1_feats,
                            src_hop2_feats, dst_feats, dst_hop1_feats, dst_hop2_feats)
    ref = jax.block_until_ready(ref)

    assert out.shape == (B, 4 * E + 8), out.shape
    max_err = float(jnp.max(jnp.abs(out - ref)))
    assert max_err < 1e-2, f"kernel/reference mismatch, max abs err = {max_err}"

    print("KERNEL_OK")
</pallas_src>

<mosaic_0001>
module attributes {stable_mosaic.version = 11 : i64} {
  func.func @kernel(%arg0: i32, %arg1: memref<8x4xf32, #tpu.memory_space<vmem>>, %arg2: memref<8x5xf32, #tpu.memory_space<vmem>>, %arg3: memref<8x6xf32, #tpu.memory_space<vmem>>, %arg4: memref<8x3x10xf32, #tpu.memory_space<vmem>>, %arg5: memref<8x3x9xf32, #tpu.memory_space<vmem>>, %arg6: memref<8x3x2x9xf32, #tpu.memory_space<vmem>>, %arg7: memref<8x3x2x10xf32, #tpu.memory_space<vmem>>, %arg8: memref<5x8xf32, #tpu.memory_space<vmem>>, %arg9: memref<10x8xf32, #tpu.memory_space<vmem>>, %arg10: memref<6x6xf32, #tpu.memory_space<vmem>>, %arg11: memref<9x6xf32, #tpu.memory_space<vmem>>, %arg12: memref<56x64xf32, #tpu.memory_space<vmem>>, %arg13: memref<4x6xf32, #tpu.memory_space<vmem>>, %arg14: memref<1x6xf32, #tpu.memory_space<vmem>>, %arg15: memref<6x8xf32, #tpu.memory_space<vmem>>, %arg16: memref<1x8xf32, #tpu.memory_space<vmem>>, %arg17: memref<8x72xf32, #tpu.memory_space<vmem>>) attributes {dimension_semantics = [#tpu.dimension_semantics<parallel>], iteration_bounds = array<i64: 2>, scalar_prefetch = 0 : i64, scratch_operands = 0 : i64, tpu.core_type = #tpu.core_type<tc>, window_params = [{transform_indices = @transform_0, window_bounds = array<i64: 8, 4>}, {transform_indices = @transform_1, window_bounds = array<i64: 8, 5>}, {transform_indices = @transform_2, window_bounds = array<i64: 8, 6>}, {transform_indices = @transform_3, window_bounds = array<i64: 8, 3, 10>}, {transform_indices = @transform_4, window_bounds = array<i64: 8, 3, 9>}, {transform_indices = @transform_5, window_bounds = array<i64: 8, 3, 2, 9>}, {transform_indices = @transform_6, window_bounds = array<i64: 8, 3, 2, 10>}, {pipeline_mode = #tpu.pipeline_mode<synchronous>, transform_indices = @transform_7, window_bounds = array<i64: 5, 8>}, {pipeline_mode = #tpu.pipeline_mode<synchronous>, transform_indices = @transform_8, window_bounds = array<i64: 10, 8>}, {pipeline_mode = #tpu.pipeline_mode<synchronous>, transform_indices = @transform_9, window_bounds = array<i64: 6, 6>}, {pipeline_mode = #tpu.pipeline_mode<synchronous>, transform_indices = @transform_10, window_bounds = array<i64: 9, 6>}, {pipeline_mode = #tpu.pipeline_mode<synchronous>, transform_indices = @transform_11, window_bounds = array<i64: 56, 64>}, {pipeline_mode = #tpu.pipeline_mode<synchronous>, transform_indices = @transform_12, window_bounds = array<i64: 4, 6>}, {pipeline_mode = #tpu.pipeline_mode<synchronous>, transform_indices = @transform_13, window_bounds = array<i64: 1, 6>}, {pipeline_mode = #tpu.pipeline_mode<synchronous>, transform_indices = @transform_14, window_bounds = array<i64: 6, 8>}, {pipeline_mode = #tpu.pipeline_mode<synchronous>, transform_indices = @transform_15, window_bounds = array<i64: 1, 8>}, {transform_indices = @transform_16, window_bounds = array<i64: 8, 72>}]} {
    %c0 = arith.constant 0 : index
    %c0_0 = arith.constant 0 : index
    %0 = vector.load %arg1[%c0, %c0_0] : memref<8x4xf32, #tpu.memory_space<vmem>>, vector<8x4xf32>
    %c0_1 = arith.constant 0 : index
    %c0_2 = arith.constant 0 : index
    %1 = vector.load %arg13[%c0_1, %c0_2] : memref<4x6xf32, #tpu.memory_space<vmem>>, vector<4x6xf32>
    %cst = arith.constant dense<0.000000e+00> : vector<8x6xf32>
    %2 = tpu.matmul %0, %1, %cst {dimension_numbers = #tpu.dot_dimension_numbers<[1], [0], [0], [1], [0, 0, 1, 1], [], []>} : vector<8x4xf32>, vector<4x6xf32>, vector<8x6xf32> -> vector<8x6xf32>
    %c0_3 = arith.constant 0 : index
    %c0_4 = arith.constant 0 : index
    %3 = vector.load %arg14[%c0_3, %c0_4] : memref<1x6xf32, #tpu.memory_space<vmem>>, vector<1x6xf32>
    %4 = vector.broadcast %3 : vector<1x6xf32> to vector<8x6xf32>
    %5 = arith.addf %2, %4 : vector<8x6xf32>
    %cst_5 = arith.constant 0.000000e+00 : f32
    %6 = vector.broadcast %cst_5 : f32 to vector<8x6xf32>
    %7 = arith.maximumf %5, %6 : vector<8x6xf32>
    %c0_6 = arith.constant 0 : index
    %c0_7 = arith.constant 0 : index
    %8 = vector.load %arg15[%c0_6, %c0_7] : memref<6x8xf32, #tpu.memory_space<vmem>>, vector<6x8xf32>
    %cst_8 = arith.constant dense<0.000000e+00> : vector<8x8xf32>
    %9 = tpu.matmul %7, %8, %cst_8 {dimension_numbers = #tpu.dot_dimension_numbers<[1], [0], [0], [1], [0, 0, 1, 1], [], []>} : vector<8x6xf32>, vector<6x8xf32>, vector<8x8xf32> -> vector<8x8xf32>
    %c0_9 = arith.constant 0 : index
    %c0_10 = arith.constant 0 : index
    %10 = vector.load %arg16[%c0_9, %c0_10] : memref<1x8xf32, #tpu.memory_space<vmem>>, vector<1x8xf32>
    %11 = vector.broadcast %10 : vector<1x8xf32> to vector<8x8xf32>
    %12 = arith.addf %9, %11 : vector<8x8xf32>
    %c0_11 = arith.constant 0 : index
    %c0_12 = arith.constant 0 : index
    %c0_13 = arith.constant 0 : index
    %13 = vector.load %arg4[%c0_11, %c0_12, %c0_13] : memref<8x3x10xf32, #tpu.memory_space<vmem>>, vector<8x3x10xf32>
    %c0_14 = arith.constant 0 : index
    %c0_15 = arith.constant 0 : index
    %c0_16 = arith.constant 0 : index
    %14 = vector.load %arg5[%c0_14, %c0_15, %c0_16] : memref<8x3x9xf32, #tpu.memory_space<vmem>>, vector<8x3x9xf32>
    %c0_17 = arith.constant 0 : index
    %c0_18 = arith.constant 0 : index
    %c0_19 = arith.constant 0 : index
    %c0_20 = arith.constant 0 : index
    %15 = vector.load %arg6[%c0_17, %c0_18, %c0_19, %c0_20] : memref<8x3x2x9xf32, #tpu.memory_space<vmem>>, vector<8x3x2x9xf32>
    %c0_21 = arith.constant 0 : index
    %c0_22 = arith.constant 0 : index
    %c0_23 = arith.constant 0 : index
    %c0_24 = arith.constant 0 : index
    %16 = vector.load %arg7[%c0_21, %c0_22, %c0_23, %c0_24] : memref<8x3x2x10xf32, #tpu.memory_space<vmem>>, vector<8x3x2x10xf32>
    %17 = vector.extract_strided_slice %15 {offsets = [0, 0, 0, 0], sizes = [8, 1, 1, 9], strides = [1, 1, 1, 1]} : vector<8x3x2x9xf32> to vector<8x1x1x9xf32>
    %18 = vector.shape_cast %17 : vector<8x1x1x9xf32> to vector<8x9xf32>
    %19 = vector.extract_strided_slice %15 {offsets = [0, 0, 1, 0], sizes = [8, 1, 1, 9], strides = [1, 1, 1, 1]} : vector<8x3x2x9xf32> to vector<8x1x1x9xf32>
    %20 = vector.shape_cast %19 : vector<8x1x1x9xf32> to vector<8x9xf32>
    %21 = arith.addf %18, %20 : vector<8x9xf32>
    %cst_25 = arith.constant 5.000000e-01 : f32
    %22 = vector.broadcast %cst_25 : f32 to vector<8x9xf32>
    %23 = arith.mulf %21, %22 : vector<8x9xf32>
    %24 = vector.extract_strided_slice %15 {offsets = [0, 1, 0, 0], sizes = [8, 1, 1, 9], strides = [1, 1, 1, 1]} : vector<8x3x2x9xf32> to vector<8x1x1x9xf32>
    %25 = vector.shape_cast %24 : vector<8x1x1x9xf32> to vector<8x9xf32>
    %26 = vector.extract_strided_slice %15 {offsets = [0, 1, 1, 0], sizes = [8, 1, 1, 9], strides = [1, 1, 1, 1]} : vector<8x3x2x9xf32> to vector<8x1x1x9xf32>
    %27 = vector.shape_cast %26 : vector<8x1x1x9xf32> to vector<8x9xf32>
    %28 = arith.addf %25, %27 : vector<8x9xf32>
    %cst_26 = arith.constant 5.000000e-01 : f32
    %29 = vector.broadcast %cst_26 : f32 to vector<8x9xf32>
    %30 = arith.mulf %28, %29 : vector<8x9xf32>
    %31 = vector.extract_strided_slice %15 {offsets = [0, 2, 0, 0], sizes = [8, 1, 1, 9], strides = [1, 1, 1, 1]} : vector<8x3x2x9xf32> to vector<8x1x1x9xf32>
    %32 = vector.shape_cast %31 : vector<8x1x1x9xf32> to vector<8x9xf32>
    %33 = vector.extract_strided_slice %15 {offsets = [0, 2, 1, 0], sizes = [8, 1, 1, 9], strides = [1, 1, 1, 1]} : vector<8x3x2x9xf32> to vector<8x1x1x9xf32>
    %34 = vector.shape_cast %33 : vector<8x1x1x9xf32> to vector<8x9xf32>
    %35 = arith.addf %32, %34 : vector<8x9xf32>
    %cst_27 = arith.constant 5.000000e-01 : f32
    %36 = vector.broadcast %cst_27 : f32 to vector<8x9xf32>
    %37 = arith.mulf %35, %36 : vector<8x9xf32>
    %38 = vector.extract_strided_slice %16 {offsets = [0, 0, 0, 0], sizes = [8, 1, 1, 10], strides = [1, 1, 1, 1]} : vector<8x3x2x10xf32> to vector<8x1x1x10xf32>
    %39 = vector.shape_cast %38 : vector<8x1x1x10xf32> to vector<8x10xf32>
    %40 = vector.extract_strided_slice %16 {offsets = [0, 0, 1, 0], sizes = [8, 1, 1, 10], strides = [1, 1, 1, 1]} : vector<8x3x2x10xf32> to vector<8x1x1x10xf32>
    %41 = vector.shape_cast %40 : vector<8x1x1x10xf32> to vector<8x10xf32>
    %42 = arith.addf %39, %41 : vector<8x10xf32>
    %cst_28 = arith.constant 5.000000e-01 : f32
    %43 = vector.broadcast %cst_28 : f32 to vector<8x10xf32>
    %44 = arith.mulf %42, %43 : vector<8x10xf32>
    %45 = vector.extract_strided_slice %16 {offsets = [0, 1, 0, 0], sizes = [8, 1, 1, 10], strides = [1, 1, 1, 1]} : vector<8x3x2x10xf32> to vector<8x1x1x10xf32>
    %46 = vector.shape_cast %45 : vector<8x1x1x10xf32> to vector<8x10xf32>
    %47 = vector.extract_strided_slice %16 {offsets = [0, 1, 1, 0], sizes = [8, 1, 1, 10], strides = [1, 1, 1, 1]} : vector<8x3x2x10xf32> to vector<8x1x1x10xf32>
    %48 = vector.shape_cast %47 : vector<8x1x1x10xf32> to vector<8x10xf32>
    %49 = arith.addf %46, %48 : vector<8x10xf32>
    %cst_29 = arith.constant 5.000000e-01 : f32
    %50 = vector.broadcast %cst_29 : f32 to vector<8x10xf32>
    %51 = arith.mulf %49, %50 : vector<8x10xf32>
    %52 = vector.extract_strided_slice %16 {offsets = [0, 2, 0, 0], sizes = [8, 1, 1, 10], strides = [1, 1, 1, 1]} : vector<8x3x2x10xf32> to vector<8x1x1x10xf32>
    %53 = vector.shape_cast %52 : vector<8x1x1x10xf32> to vector<8x10xf32>
    %54 = vector.extract_strided_slice %16 {offsets = [0, 2, 1, 0], sizes = [8, 1, 1, 10], strides = [1, 1, 1, 1]} : vector<8x3x2x10xf32> to vector<8x1x1x10xf32>
    %55 = vector.shape_cast %54 : vector<8x1x1x10xf32> to vector<8x10xf32>
    %56 = arith.addf %53, %55 : vector<8x10xf32>
    %cst_30 = arith.constant 5.000000e-01 : f32
    %57 = vector.broadcast %cst_30 : f32 to vector<8x10xf32>
    %58 = arith.mulf %56, %57 : vector<8x10xf32>
    %59 = vector.extract_strided_slice %13 {offsets = [0, 0, 0], sizes = [8, 1, 10], strides = [1, 1, 1]} : vector<8x3x10xf32> to vector<8x1x10xf32>
    %60 = vector.shape_cast %59 : vector<8x1x10xf32> to vector<8x10xf32>
    %61 = vector.extract_strided_slice %13 {offsets = [0, 1, 0], sizes = [8, 1, 10], strides = [1, 1, 1]} : vector<8x3x10xf32> to vector<8x1x10xf32>
    %62 = vector.shape_cast %61 : vector<8x1x10xf32> to vector<8x10xf32>
    %63 = vector.extract_strided_slice %13 {offsets = [0, 2, 0], sizes = [8, 1, 10], strides = [1, 1, 1]} : vector<8x3x10xf32> to vector<8x1x10xf32>
    %64 = vector.shape_cast %63 : vector<8x1x10xf32> to vector<8x10xf32>
    %65 = arith.addf %60, %62 : vector<8x10xf32>
    %66 = arith.addf %65, %64 : vector<8x10xf32>
    %cst_31 = arith.constant 0.333333343 : f32
    %67 = vector.broadcast %cst_31 : f32 to vector<8x10xf32>
    %68 = arith.mulf %66, %67 : vector<8x10xf32>
    %69 = vector.extract_strided_slice %14 {offsets = [0, 0, 0], sizes = [8, 1, 9], strides = [1, 1, 1]} : vector<8x3x9xf32> to vector<8x1x9xf32>
    %70 = vector.shape_cast %69 : vector<8x1x9xf32> to vector<8x9xf32>
    %71 = vector.extract_strided_slice %14 {offsets = [0, 1, 0], sizes = [8, 1, 9], strides = [1, 1, 1]} : vector<8x3x9xf32> to vector<8x1x9xf32>
    %72 = vector.shape_cast %71 : vector<8x1x9xf32> to vector<8x9xf32>
    %73 = vector.extract_strided_slice %14 {offsets = [0, 2, 0], sizes = [8, 1, 9], strides = [1, 1, 1]} : vector<8x3x9xf32> to vector<8x1x9xf32>
    %74 = vector.shape_cast %73 : vector<8x1x9xf32> to vector<8x9xf32>
    %75 = arith.addf %70, %72 : vector<8x9xf32>
    %76 = arith.addf %75, %74 : vector<8x9xf32>
    %cst_32 = arith.constant 0.333333343 : f32
    %77 = vector.broadcast %cst_32 : f32 to vector<8x9xf32>
    %78 = arith.mulf %76, %77 : vector<8x9xf32>
    %c0_33 = arith.constant 0 : index
    %c0_34 = arith.constant 0 : index
    %79 = vector.load %arg2[%c0_33, %c0_34] : memref<8x5xf32, #tpu.memory_space<vmem>>, vector<8x5xf32>
    %80 = vector.extract_strided_slice %14 {offsets = [0, 0, 0], sizes = [8, 1, 5], strides = [1, 1, 1]} : vector<8x3x9xf32> to vector<8x1x5xf32>
    %81 = vector.shape_cast %80 : vector<8x1x5xf32> to vector<8x5xf32>
    %82 = vector.extract_strided_slice %14 {offsets = [0, 1, 0], sizes = [8, 1, 5], strides = [1, 1, 1]} : vector<8x3x9xf32> to vector<8x1x5xf32>
    %83 = vector.shape_cast %82 : vector<8x1x5xf32> to vector<8x5xf32>
    %84 = vector.extract_strided_slice %14 {offsets = [0, 2, 0], sizes = [8, 1, 5], strides = [1, 1, 1]} : vector<8x3x9xf32> to vector<8x1x5xf32>
    %85 = vector.shape_cast %84 : vector<8x1x5xf32> to vector<8x5xf32>
    %86 = tpu.concatenate %79, %81, %83, %85 in 0 : vector<8x5xf32>, vector<8x5xf32>, vector<8x5xf32>, vector<8x5xf32> -> vector<32x5xf32>
    %c0_35 = arith.constant 0 : index
    %c0_36 = arith.constant 0 : index
    %87 = vector.load %arg3[%c0_35, %c0_36] : memref<8x6xf32, #tpu.memory_space<vmem>>, vector<8x6xf32>
    %88 = vector.extract_strided_slice %13 {offsets = [0, 0, 0], sizes = [8, 1, 6], strides = [1, 1, 1]} : vector<8x3x10xf32> to vector<8x1x6xf32>
    %89 = vector.shape_cast %88 : vector<8x1x6xf32> to vector<8x6xf32>
    %90 = vector.extract_strided_slice %13 {offsets = [0, 1, 0], sizes = [8, 1, 6], strides = [1, 1, 1]} : vector<8x3x10xf32> to vector<8x1x6xf32>
    %91 = vector.shape_cast %90 : vector<8x1x6xf32> to vector<8x6xf32>
    %92 = vector.extract_strided_slice %13 {offsets = [0, 2, 0], sizes = [8, 1, 6], strides = [1, 1, 1]} : vector<8x3x10xf32> to vector<8x1x6xf32>
    %93 = vector.shape_cast %92 : vector<8x1x6xf32> to vector<8x6xf32>
    %94 = tpu.concatenate %87, %89, %91, %93 in 0 : vector<8x6xf32>, vector<8x6xf32>, vector<8x6xf32>, vector<8x6xf32> -> vector<32x6xf32>
    %95 = tpu.concatenate %68, %44, %51, %58 in 0 : vector<8x10xf32>, vector<8x10xf32>, vector<8x10xf32>, vector<8x10xf32> -> vector<32x10xf32>
    %96 = tpu.concatenate %78, %23, %30, %37 in 0 : vector<8x9xf32>, vector<8x9xf32>, vector<8x9xf32>, vector<8x9xf32> -> vector<32x9xf32>
    %c0_37 = arith.constant 0 : index
    %c0_38 = arith.constant 0 : index
    %97 = vector.load %arg8[%c0_37, %c0_38] : memref<5x8xf32, #tpu.memory_space<vmem>>, vector<5x8xf32>
    %cst_39 = arith.constant dense<0.000000e+00> : vector<32x8xf32>
    %98 = tpu.matmul %86, %97, %cst_39 {dimension_numbers = #tpu.dot_dimension_numbers<[1], [0], [0], [1], [0, 0, 1, 1], [], []>} : vector<32x5xf32>, vector<5x8xf32>, vector<32x8xf32> -> vector<32x8xf32>
    %cst_40 = arith.constant 0.000000e+00 : f32
    %99 = vector.broadcast %cst_40 : f32 to vector<32x8xf32>
    %100 = arith.maximumf %98, %99 : vector<32x8xf32>
    %c0_41 = arith.constant 0 : index
    %c0_42 = arith.constant 0 : index
    %101 = vector.load %arg10[%c0_41, %c0_42] : memref<6x6xf32, #tpu.memory_space<vmem>>, vector<6x6xf32>
    %cst_43 = arith.constant dense<0.000000e+00> : vector<32x6xf32>
    %102 = tpu.matmul %94, %101, %cst_43 {dimension_numbers = #tpu.dot_dimension_numbers<[1], [0], [0], [1], [0, 0, 1, 1], [], []>} : vector<32x6xf32>, vector<6x6xf32>, vector<32x6xf32> -> vector<32x6xf32>
    %cst_44 = arith.constant 0.000000e+00 : f32
    %103 = vector.broadcast %cst_44 : f32 to vector<32x6xf32>
    %104 = arith.maximumf %102, %103 : vector<32x6xf32>
    %c0_45 = arith.constant 0 : index
    %c0_46 = arith.constant 0 : index
    %105 = vector.load %arg9[%c0_45, %c0_46] : memref<10x8xf32, #tpu.memory_space<vmem>>, vector<10x8xf32>
    %cst_47 = arith.constant dense<0.000000e+00> : vector<32x8xf32>
    %106 = tpu.matmul %95, %105, %cst_47 {dimension_numbers = #tpu.dot_dimension_numbers<[1], [0], [0], [1], [0, 0, 1, 1], [], []>} : vector<32x10xf32>, vector<10x8xf32>, vector<32x8xf32> -> vector<32x8xf32>
    %cst_48 = arith.constant 0.000000e+00 : f32
    %107 = vector.broadcast %cst_48 : f32 to vector<32x8xf32>
    %108 = arith.maximumf %106, %107 : vector<32x8xf32>
    %c0_49 = arith.constant 0 : index
    %c0_50 = arith.constant 0 : index
    %109 = vector.load %arg11[%c0_49, %c0_50] : memref<9x6xf32, #tpu.memory_space<vmem>>, vector<9x6xf32>
    %cst_51 = arith.constant dense<0.000000e+00> : vector<32x6xf32>
    %110 = tpu.matmul %96, %109, %cst_51 {dimension_numbers = #tpu.dot_dimension_numbers<[1], [0], [0], [1], [0, 0, 1, 1], [], []>} : vector<32x9xf32>, vector<9x6xf32>, vector<32x6xf32> -> vector<32x6xf32>
    %cst_52 = arith.constant 0.000000e+00 : f32
    %111 = vector.broadcast %cst_52 : f32 to vector<32x6xf32>
    %112 = arith.maximumf %110, %111 : vector<32x6xf32>
    %113 = vector.extract_strided_slice %100 {offsets = [0, 0], sizes = [8, 8], strides = [1, 1]} : vector<32x8xf32> to vector<8x8xf32>
    %114 = vector.extract_strided_slice %100 {offsets = [8, 0], sizes = [8, 8], strides = [1, 1]} : vector<32x8xf32> to vector<8x8xf32>
    %115 = vector.extract_strided_slice %100 {offsets = [16, 0], sizes = [8, 8], strides = [1, 1]} : vector<32x8xf32> to vector<8x8xf32>
    %116 = arith.addf %114, %115 : vector<8x8xf32>
    %117 = vector.extract_strided_slice %100 {offsets = [24, 0], sizes = [8, 8], strides = [1, 1]} : vector<32x8xf32> to vector<8x8xf32>
    %118 = arith.addf %116, %117 : vector<8x8xf32>
    %cst_53 = arith.constant 0.333333343 : f32
    %119 = vector.broadcast %cst_53 : f32 to vector<8x8xf32>
    %120 = arith.mulf %118, %119 : vector<8x8xf32>
    %121 = vector.extract_strided_slice %104 {offsets = [0, 0], sizes = [8, 6], strides = [1, 1]} : vector<32x6xf32> to vector<8x6xf32>
    %122 = vector.extract_strided_slice %104 {offsets = [8, 0], sizes = [8, 6], strides = [1, 1]} : vector<32x6xf32> to vector<8x6xf32>
    %123 = vector.extract_strided_slice %104 {offsets = [16, 0], sizes = [8, 6], strides = [1, 1]} : vector<32x6xf32> to vector<8x6xf32>
    %124 = arith.addf %122, %123 : vector<8x6xf32>
    %125 = vector.extract_strided_slice %104 {offsets = [24, 0], sizes = [8, 6], strides = [1, 1]} : vector<32x6xf32> to vector<8x6xf32>
    %126 = arith.addf %124, %125 : vector<8x6xf32>
    %cst_54 = arith.constant 0.333333343 : f32
    %127 = vector.broadcast %cst_54 : f32 to vector<8x6xf32>
    %128 = arith.mulf %126, %127 : vector<8x6xf32>
    %129 = vector.extract_strided_slice %108 {offsets = [0, 0], sizes = [8, 8], strides = [1, 1]} : vector<32x8xf32> to vector<8x8xf32>
    %130 = vector.extract_strided_slice %108 {offsets = [8, 0], sizes = [8, 8], strides = [1, 1]} : vector<32x8xf32> to vector<8x8xf32>
    %131 = vector.extract_strided_slice %108 {offsets = [16, 0], sizes = [8, 8], strides = [1, 1]} : vector<32x8xf32> to vector<8x8xf32>
    %132 = arith.addf %130, %131 : vector<8x8xf32>
    %133 = vector.extract_strided_slice %108 {offsets = [24, 0], sizes = [8, 8], strides = [1, 1]} : vector<32x8xf32> to vector<8x8xf32>
    %134 = arith.addf %132, %133 : vector<8x8xf32>
    %cst_55 = arith.constant 0.333333343 : f32
    %135 = vector.broadcast %cst_55 : f32 to vector<8x8xf32>
    %136 = arith.mulf %134, %135 : vector<8x8xf32>
    %137 = vector.extract_strided_slice %112 {offsets = [0, 0], sizes = [8, 6], strides = [1, 1]} : vector<32x6xf32> to vector<8x6xf32>
    %138 = vector.extract_strided_slice %112 {offsets = [8, 0], sizes = [8, 6], strides = [1, 1]} : vector<32x6xf32> to vector<8x6xf32>
    %139 = vector.extract_strided_slice %112 {offsets = [16, 0], sizes = [8, 6], strides = [1, 1]} : vector<32x6xf32> to vector<8x6xf32>
    %140 = arith.addf %138, %139 : vector<8x6xf32>
    %141 = vector.extract_strided_slice %112 {offsets = [24, 0], sizes = [8, 6], strides = [1, 1]} : vector<32x6xf32> to vector<8x6xf32>
    %142 = arith.addf %140, %141 : vector<8x6xf32>
    %cst_56 = arith.constant 0.333333343 : f32
    %143 = vector.broadcast %cst_56 : f32 to vector<8x6xf32>
    %144 = arith.mulf %142, %143 : vector<8x6xf32>
    %145 = tpu.concatenate %113, %129, %128, %144, %121, %137, %120, %136 in 1 : vector<8x8xf32>, vector<8x8xf32>, vector<8x6xf32>, vector<8x6xf32>, vector<8x6xf32>, vector<8x6xf32>, vector<8x8xf32>, vector<8x8xf32> -> vector<8x56xf32>
    %c0_57 = arith.constant 0 : index
    %c0_58 = arith.constant 0 : index
    %146 = vector.load %arg12[%c0_57, %c0_58] : memref<56x64xf32, #tpu.memory_space<vmem>>, vector<56x64xf32>
    %cst_59 = arith.constant dense<0.000000e+00> : vector<8x64xf32>
    %147 = tpu.matmul %145, %146, %cst_59 {dimension_numbers = #tpu.dot_dimension_numbers<[1], [0], [0], [1], [0, 0, 1, 1], [], []>} : vector<8x56xf32>, vector<56x64xf32>, vector<8x64xf32> -> vector<8x64xf32>
    %cst_60 = arith.constant 0.000000e+00 : f32
    %148 = vector.broadcast %cst_60 : f32 to vector<8x64xf32>
    %149 = arith.maximumf %147, %148 : vector<8x64xf32>
    %150 = tpu.concatenate %149, %12 in 1 : vector<8x64xf32>, vector<8x8xf32> -> vector<8x72xf32>
    %c0_61 = arith.constant 0 : index
    %c0_62 = arith.constant 0 : index
    %151 = vector.load %arg17[%c0_61, %c0_62] : memref<8x72xf32, #tpu.memory_space<vmem>>, vector<8x72xf32>
    tpu.vector_store %arg17[%c0_61, %c0_62], %150 {strides = array<i32>} : memref<8x72xf32, #tpu.memory_space<vmem>>, vector<8x72xf32>,
    return
  }
  func.func @transform_0(%arg0: i32) -> (i32, i32) {
    %c0_i32 = arith.constant 0 : i32
    %c0_i32_0 = arith.constant 0 : i32
    return %arg0, %c0_i32 : i32, i32
  }
  func.func @transform_1(%arg0: i32) -> (i32, i32) {
    %c0_i32 = arith.constant 0 : i32
    %c0_i32_0 = arith.constant 0 : i32
    return %arg0, %c0_i32 : i32, i32
  }
  func.func @transform_2(%arg0: i32) -> (i32, i32) {
    %c0_i32 = arith.constant 0 : i32
    %c0_i32_0 = arith.constant 0 : i32
    return %arg0, %c0_i32 : i32, i32
  }
  func.func @transform_3(%arg0: i32) -> (i32, i32, i32) {
    %c0_i32 = arith.constant 0 : i32
    %c0_i32_0 = arith.constant 0 : i32
    %c0_i32_1 = arith.constant 0 : i32
    return %arg0, %c0_i32, %c0_i32_0 : i32, i32, i32
  }
  func.func @transform_4(%arg0: i32) -> (i32, i32, i32) {
    %c0_i32 = arith.constant 0 : i32
    %c0_i32_0 = arith.constant 0 : i32
    %c0_i32_1 = arith.constant 0 : i32
    return %arg0, %c0_i32, %c0_i32_0 : i32, i32, i32
  }
  func.func @transform_5(%arg0: i32) -> (i32, i32, i32, i32) {
    %c0_i32 = arith.constant 0 : i32
    %c0_i32_0 = arith.constant 0 : i32
    %c0_i32_1 = arith.constant 0 : i32
    %c0_i32_2 = arith.constant 0 : i32
    return %arg0, %c0_i32, %c0_i32_0, %c0_i32_1 : i32, i32, i32, i32
  }
  func.func @transform_6(%arg0: i32) -> (i32, i32, i32, i32) {
    %c0_i32 = arith.constant 0 : i32
    %c0_i32_0 = arith.constant 0 : i32
    %c0_i32_1 = arith.constant 0 : i32
    %c0_i32_2 = arith.constant 0 : i32
    return %arg0, %c0_i32, %c0_i32_0, %c0_i32_1 : i32, i32, i32, i32
  }
  func.func @transform_7(%arg0: i32) -> (i32, i32) {
    %c0_i32 = arith.constant 0 : i32
    %c0_i32_0 = arith.constant 0 : i32
    %c0_i32_1 = arith.constant 0 : i32
    return %c0_i32, %c0_i32_0 : i32, i32
  }
  func.func @transform_8(%arg0: i32) -> (i32, i32) {
    %c0_i32 = arith.constant 0 : i32
    %c0_i32_0 = arith.constant 0 : i32
    %c0_i32_1 = arith.constant 0 : i32
    return %c0_i32, %c0_i32_0 : i32, i32
  }
  func.func @transform_9(%arg0: i32) -> (i32, i32) {
    %c0_i32 = arith.constant 0 : i32
    %c0_i32_0 = arith.constant 0 : i32
    %c0_i32_1 = arith.constant 0 : i32
    return %c0_i32, %c0_i32_0 : i32, i32
  }
  func.func @transform_10(%arg0: i32) -> (i32, i32) {
    %c0_i32 = arith.constant 0 : i32
    %c0_i32_0 = arith.constant 0 : i32
    %c0_i32_1 = arith.constant 0 : i32
    return %c0_i32, %c0_i32_0 : i32, i32
  }
  func.func @transform_11(%arg0: i32) -> (i32, i32) {
    %c0_i32 = arith.constant 0 : i32
    %c0_i32_0 = arith.constant 0 : i32
    %c0_i32_1 = arith.constant 0 : i32
    return %c0_i32, %c0_i32_0 : i32, i32
  }
  func.func @transform_12(%arg0: i32) -> (i32, i32) {
    %c0_i32 = arith.constant 0 : i32
    %c0_i32_0 = arith.constant 0 : i32
    %c0_i32_1 = arith.constant 0 : i32
    return %c0_i32, %c0_i32_0 : i32, i32
  }
  func.func @transform_13(%arg0: i32) -> (i32, i32) {
    %c0_i32 = arith.constant 0 : i32
    %c0_i32_0 = arith.constant 0 : i32
    %c0_i32_1 = arith.constant 0 : i32
    return %c0_i32, %c0_i32_0 : i32, i32
  }
  func.func @transform_14(%arg0: i32) -> (i32, i32) {
    %c0_i32 = arith.constant 0 : i32
    %c0_i32_0 = arith.constant 0 : i32
    %c0_i32_1 = arith.constant 0 : i32
    return %c0_i32, %c0_i32_0 : i32, i32
  }
  func.func @transform_15(%arg0: i32) -> (i32, i32) {
    %c0_i32 = arith.constant 0 : i32
    %c0_i32_0 = arith.constant 0 : i32
    %c0_i32_1 = arith.constant 0 : i32
    return %c0_i32, %c0_i32_0 : i32, i32
  }
  func.func @transform_16(%arg0: i32) -> (i32, i32) {
    %c0_i32 = arith.constant 0 : i32
    %c0_i32_0 = arith.constant 0 : i32
    return %arg0, %c0_i32 : i32, i32
  }
}

</mosaic_0001>

<bundles_post_ra>
// kernel: tpu_custom_call.1
= control target key start
LH: loop header
LB: loop body
LE: loop exit
PB: predicated region body
PF: predicated region fallthrough
CT: control target
= control target key end

     0   :  { %s2580_s0 = inlined_call_operand.vmem [shape: f32[16,4], index: 0, kind: input, shape index: {}]   ;;  %s2581_s1 = inlined_call_operand.vmem [shape: f32[16,5], index: 1, kind: input, shape index: {}]   ;;  %s2582_s2 = inlined_call_operand.vmem [shape: f32[16,6], index: 2, kind: input, shape index: {}]   ;;  %s2583_s3 = inlined_call_operand.vmem [shape: f32[16,3,10], index: 3, kind: input, shape index: {}]   ;;  %s2584_s4 = inlined_call_operand.vmem [shape: f32[16,3,9], index: 4, kind: input, shape index: {}]   ;;  %s2585_s5 = inlined_call_operand.vmem [shape: f32[16,3,2,9], index: 5, kind: input, shape index: {}]   ;;  %s2586_s6 = inlined_call_operand.vmem [shape: f32[16,3,2,10], index: 6, kind: input, shape index: {}]   ;;  %s2587_s7 = inlined_call_operand.vmem [shape: f32[5,8], index: 7, kind: input, shape index: {}]   ;;  %s2588_s8 = inlined_call_operand.vmem [shape: f32[10,8], index: 8, kind: input, shape index: {}]   ;;  %s2589_s9 = inlined_call_operand.vmem [shape: f32[6,6], index: 9, kind: input, shape index: {}]   ;;  %s2590_s10 = inlined_call_operand.vmem [shape: f32[9,6], index: 10, kind: input, shape index: {}]   ;;  %s2591_s11 = inlined_call_operand.vmem [shape: f32[56,64], index: 11, kind: input, shape index: {}]   ;;  %s2592_s12 = inlined_call_operand.vmem [shape: f32[4,6], index: 12, kind: input, shape index: {}]   ;;  %s2593_s13 = inlined_call_operand.vmem [shape: f32[1,6], index: 13, kind: input, shape index: {}]   ;;  %s2594_s14 = inlined_call_operand.vmem [shape: f32[6,8], index: 14, kind: input, shape index: {}]   ;;  %s2595_s15 = inlined_call_operand.vmem [shape: f32[1,8], index: 15, kind: input, shape index: {}]   ;;  %s2596_s16 = inlined_call_operand.hbm [shape: f32[16,72], index: 16, kind: output, shape index: {}]  }
   0x1   :  { %2602 = sst [smem:[#allocation10_spill]] %s2580_s0 }
   0x2   :  { %2603 = sst [smem:[#allocation11_spill]] %s2589_s9 }
   0x3   :  { %2604 = sst [smem:[#allocation12_spill]] %s2592_s12 }
   0x4   :  { %21 = vsyncpa [#allocation3], 0 }
   0x5   :  { %23 = vsyncpa [#allocation3 + $0x1], 0  ;;  %s2085_s21 = smov 0   ;;  %s2087_s22 = smov 0  }
   0x6   :  { %s2089_s23 = smov 0   ;;  %s2091_s24 = smov 0  }
   0x7 LB: > { %2605 = sst [smem:[#allocation5_spill]] %s1978_s21  ;;  %s1832_s25 = sadd.s32 4294967295, %s1990_s24   ;;  %s1990_s24 = sphi %s2091_s24, %s2617_s24   ;;  %s1986_s23 = sphi %s2089_s23, %s2619_s23   ;;  %s1982_s22 = sphi %s2087_s22, %s2621_s22   ;;  %s1978_s21 = sphi %s2085_s21, %s2620_s21  }
   0x8   : > { %2606 = sst [smem:[#allocation6_spill]] %s1986_s23  ;;  %s1833_s26 = sadd.s32 4294967294, %s1990_s24  }
   0x9   : > { %s2108_s27 = sadd.s32 1, %s1990_s24   ;;  %s407_s28 = sadd.s32 1, %s1986_s23 }
   0xa   : > { %2607 = sst [smem:[#allocation7_spill]] %s2108_s27  ;;  %s404_s29 = ssub.s32 %s1990_s24, %s2108_s27 }
   0xb   : > { %p417_p0 = scmp.ne.s32.totalorder %s1986_s23, %s1982_s22  ;;  %p405_p1 = scmp.eq.s32.totalorder %s404_s29, 0 }
   0xc   : > { %p418_p2 = scmp.eq.s32.totalorder %s1832_s25, 1  ;;  %p423_p3 = scmp.ne.s32.totalorder %s1982_s22, %s1978_s21 }
   0xd   : > { %p424_p4 = scmp.eq.s32.totalorder %s1833_s26, 1  ;;  %p1836_p7 = scmp.ge.s32.totalorder %s1990_s24, 1 }
   0xe   : > { %s2118_s30 = scalar_select %p405_p1, %s1986_s23, %s407_s28  }
   0xf   : > { %p2120_p5 = por %p418_p2, %p417_p0  ;;  %p2124_p6 = por %p424_p4, %p423_p3 }
  0x10   : > { %2608 = sst [smem:[#allocation8_spill]] %s2118_s30  ;;  %p528_p8 = scmp.lt.s32.totalorder %s1990_s24, 3 }
  0x11   : > { %s2610_s17 = scalar_select %p2124_p6, 1, 0 }
  0x12   : > { %p529_p9 = pnand %p1836_p7, %p528_p8 }
  0x13   : > { %2611 = sst [smem:[#allocation9_spill]] %s2610_s17  ;;  %p607_p10 = scmp.lt.s32.totalorder (!%p529_p9), %s1832_s25, 1 }
  0x14   : > { %532 = sbr.rel (%p529_p9) target bundleno = 594 (0x252), region = 84  ;;  %s2612_s12 = sld [smem:[#allocation12_spill]] (!%p529_p9) }
  0x15   : > { %s2613_s9 = sld [smem:[#allocation11_spill]] (!%p529_p9)  ;;  %s2136_s28 = sshll.u32 (!%p529_p9), %s1832_s25, 3 }
  0x16   : > { %p620_p11 = scmp.lt.s32.totalorder (!%p529_p9), %s2136_s28, 15  ;;  %s1994_s21 = smov (!%p529_p9), 34  }
  0x17   : > { %s1996_s18 = smov (!%p529_p9), 22   ;;  %s1948_s23 = scalar_lea.hbm (!%p529_p9), %s2596_s16, 16 }
  0x19   : > { %vm655_vm0 = vcmask 1043456   ;;  %vm689_vm1 = vcmask 1045504   ;;  %s2623_s25 = smov (!%p607_p10, %s1832_s25), 1  ;;  %vm651_vm2 = vcmask 31744   ;;  %v1497_v2 = vld [vmem:[%s2588_s8 + $0x8] sm:$0x3] }
  0x1a   : > { %v646_v0 = vld [vmem:[%s2612_s12] sm:$0xf]  ;;  %vm1507_vm3 = vcmask 1041408   ;;  %s2143_s19 = sshll.u32 %s2623_s25, 3  ;;  %vm685_vm4 = vcmask 48128   ;;  %vm1147_vm5 = vcmask 1041409  }
  0x1b   : > { %1849 = vmatpush.msk.msra.mxu0 %vm655_vm0, %v646_v0  ;;  %v1450_v1 = vld [vmem:[%s2613_s9] sm:$0x3f]  ;;  %s2614_s9 = sld [smem:[#allocation10_spill]]  ;;  %s618_s27 = scalar_lea.vmem %s2582_s2, %s2143_s19  ;;  %vm1150_vm6 = vcmask 1042434   ;;  %vm1153_vm7 = vcmask 1043459   ;;  %vm1156_vm8 = vcmask 1044484  }
  0x1c   : > { %1858 = vmatpush.msk.msra.mxu3 %vm689_vm1, %v1450_v1  ;;  %v1496_v3 = vld [vmem:[%s2588_s8] sm:$0xff]  ;;  %s2157_s25 = scalar_select %p620_p11, %s2136_s28, 15  ;;  %vm1159_vm9 = vcmask 1045509   ;;  %vm1161_vm10 = vcmask 1046534   ;;  %vm1163_vm11 = vcmask 1047559   ;;  %vm1498_vm12 = vcmask 80896  }
  0x1d   : > { %1863 = vmatpush.msk.msrb.mxu0 %vm1507_vm3, %v1497_v2  ;;  %v1189_v5 = vld [vmem:[%s618_s27] sm:$0xff]  ;;  %vm1555_vm13 = vcmask 1040384   ;;  %vm1413_vm14 = vcmask 1044480   ;;  %vm1546_vm15 = vcmask 72704   ;;  %vm1403_vm0 = vcmask 39936  }
  0x1e   : > { %1859 = vmatmul.msk.f32.vlgmr.msra.gmra.mxu3 %vm685_vm4, %v1189_v5  ;;  %s1842_s29 = sshll.u32 %s2157_s25, 2  ;;  %s1878_s17 = smul.u32 6, %s2157_s25  ;;  %vm1636_vm3 = vcmask 179200  }
  0x1f   : > { %1526 = vmatpush.msrb.mxu0 %v1496_v3  ;;  %s623_s30 = scalar_lea.vmem %s2583_s3, %s1842_s29  ;;  %s629_s27 = scalar_lea.vmem %s2584_s4, %s1842_s29 }
  0x20   : > { %v713_v6 = vld [vmem:[%s623_s30] sm:$0x7]  ;;  %v2166_v7 = vld [vmem:[%s623_s30 + $0x4] sm:$0x7]  ;;  %v2168_v8 = vld [vmem:[%s623_s30 + $0x8] sm:$0x7]  ;;  %s2303_s26 = scalar_lea.vmem %s2586_s6, %s1878_s17  ;;  %s2343_s20 = scalar_lea.vmem %s2585_s5, %s1878_s17 }
  0x21   : > { %s610_s12 = scalar_lea.vmem %s2614_s9, %s2143_s19  ;;  %v2170_v9 = vld [vmem:[%s623_s30 + $0xc] sm:$0x7]  ;;  %v2172_v10 = vld [vmem:[%s623_s30 + $0x10] sm:$0x7]  ;;  %v2174_v11 = vld [vmem:[%s623_s30 + $0x14] sm:$0x7] }
  0x22   : > { %v645_v4 = vld [vmem:[%s610_s12] sm:$0xff]  ;;  %v2176_v12 = vld [vmem:[%s623_s30 + $0x18] sm:$0x7]  ;;  %v2178_v13 = vld [vmem:[%s623_s30 + $0x1c] sm:$0x7]  ;;  %v1190_v14 = vrot.slane %v2166_v7, 7  ;;  %s614_s12 = scalar_lea.vmem %s2581_s1, %s2143_s19 }
  0x23   : > { %1850 = vmatmul.msk.f32.vlgmr.msra.gmra.mxu0 %vm651_vm2, %v645_v4  ;;  %v1192_v15 = vrot.slane %v2168_v8, 6  ;;  %v1031_v16 = vrot.slane %v2176_v12, 1  ;;  %v1032_v17 = vrot.slane %v2178_v13, 1  ;;  %v1194_v18 = vrot.slane %v2170_v9, 5  ;;  %s1992_s19 = smov 8   ;;  %s1998_s29 = smov 40  }
  0x24   : > { %v1191_v19 = vsel %vm1147_vm5, %v1190_v14, %v713_v6  ;;  %v1196_v20 = vrot.slane %v2172_v10, 4  ;;  %v1198_v21 = vrot.slane %v2174_v11, 3  ;;  %v1025_v22 = vrot.slane %v713_v6, 1  ;;  %s1999_s9 = smov 64   ;;  %s604_s30 = sand.u32 1, %s1982_s22  }
  0x25   : > { %v1047_v23 = vadd.f32 %v1031_v16, %v2176_v12  ;;  %v1055_v24 = vrot.slane %v2176_v12, 2  ;;  %v1193_v25 = vsel %vm1150_vm6, %v1192_v15, %v1191_v19  ;;  %v1048_v26 = vadd.f32 %v1032_v17, %v2178_v13  ;;  %s1687_s25 = scalar_lea.sflag [#allocation3], %s604_s30 }
  0x26   : > { %v1195_v27 = vsel %vm1153_vm7, %v1194_v18, %v1193_v25  ;;  %v1202_v28 = vsel %vm1147_vm5, %v2166_v7, %v1025_v22  ;;  %v1203_v29 = vrot.slane %v2168_v8, 7  ;;  %v1041_v31 = vadd.f32 %v1025_v22, %v713_v6 }
  0x27   : > { %v1197_v30 = vsel %vm1156_vm8, %v1196_v20, %v1195_v27  ;;  %v1056_v32 = vrot.slane %v2178_v13, 2  ;;  %v1205_v33 = vrot.slane %v2170_v9, 6  ;;  %v1207_v36 = vrot.slane %v2172_v10, 5 }
  0x28   : > { %v1199_v34 = vsel %vm1159_vm9, %v1198_v21, %v1197_v30  ;;  %v1204_v35 = vsel %vm1150_vm6, %v1203_v29, %v1202_v28  ;;  %v1209_v37 = vrot.slane %v2174_v11, 4  ;;  %v1211_v40 = vrot.slane %v2176_v12, 3 }
  0x29   : > { %v1200_v38 = vsel %vm1161_vm10, %v1055_v24, %v1199_v34  ;;  %v1206_v39 = vsel %vm1153_vm7, %v1205_v33, %v1204_v35  ;;  %v1026_v41 = vrot.slane %v2166_v7, 1  ;;  %v1049_v44 = vrot.slane %v713_v6, 2 }
  0x2a   : > { %v1201_v42 = vsel %vm1163_vm11, %v1032_v17, %v1200_v38  ;;  %v1208_v43 = vsel %vm1156_vm8, %v1207_v36, %v1206_v39  ;;  %v1216_v45 = vrot.slane %v2170_v9, 7  ;;  %v1071_v46 = vadd.f32 %v1055_v24, %v1047_v23 }
  0x2b   : > { %1860 = vmatmul.msk.f32.gmra.mxu3 %vm685_vm4, %v1201_v42  ;;  %v1210_v47 = vsel %vm1159_vm9, %v1209_v37, %v1208_v43  ;;  %v1218_v48 = vrot.slane %v2172_v10, 6  ;;  %v1072_v49 = vadd.f32 %v1056_v32, %v1048_v26  ;;  %v1042_v50 = vadd.f32 %v1026_v41, %v2166_v7  ;;  %v2260_v43 = vld [vmem:[%s629_s27] sm:$0x7] }
  0x2c   : > { %v1214_v51 = vsel %vm1147_vm5, %v1026_v41, %v1049_v44  ;;  %v1220_v52 = vrot.slane %v2174_v11, 5  ;;  %v1212_v53 = vsel %vm1161_vm10, %v1211_v40, %v1210_v47  ;;  %v1065_v54 = vadd.f32 %v1049_v44, %v1041_v31  ;;  %v2255_v40 = vld [vmem:[%s629_s27 + $0x4] sm:$0x7]  ;;  %v2257_v41 = vld [vmem:[%s629_s27 + $0x8] sm:$0x7] }
  0x2d   : > { %v1215_v55 = vsel %vm1150_vm6, %v2168_v8, %v1214_v51  ;;  %v1027_v56 = vrot.slane %v2168_v8, 1  ;;  %v1028_v58 = vrot.slane %v2170_v9, 1  ;;  %v1029_v59 = vrot.slane %v2172_v10, 1  ;;  %v2262_v44 = vld [vmem:[%s629_s27 + $0xc] sm:$0x7] }
  0x2e   : > { %v1217_v57 = vsel %vm1153_vm7, %v1216_v45, %v1215_v55  ;;  %v1030_v60 = vrot.slane %v2174_v11, 1  ;;  %v1050_v63 = vrot.slane %v2166_v7, 2  ;;  %v1051_v0 = vrot.slane %v2168_v8, 2  ;;  %v2279_v55 = vld [vmem:[%s629_s27 + $0x18] sm:$0x7] }
  0x2f   : > { %v1219_v61 = vsel %vm1156_vm8, %v1218_v48, %v1217_v57  ;;  %v1043_v62 = vadd.f32 %v1027_v56, %v2168_v8  ;;  %v1213_v1 = vsel %vm1163_vm11, %v1056_v32, %v1212_v53  ;;  %v1044_v2 = vadd.f32 %v1028_v58, %v2170_v9 }
  0x30   : > { %v1045_v3 = vadd.f32 %v1029_v59, %v2172_v10  ;;  %v1046_v4 = vadd.f32 %v1030_v60, %v2174_v11  ;;  %v1222_v5 = vrot.slane %v2176_v12, 4  ;;  %v1052_v6 = vrot.slane %v2170_v9, 2  ;;  %v2287_v60 = vld [vmem:[%s629_s27 + $0x1c] sm:$0x7] }
  0x31   : > { %v1053_v14 = vrot.slane %v2172_v10, 2  ;;  %v1054_v15 = vrot.slane %v2174_v11, 2  ;;  %v1221_v7 = vsel %vm1159_vm9, %v1220_v52, %v1219_v61  ;;  %v1224_v8 = vrot.slane %v2178_v13, 3 }
  0x32   : > { %v1066_v16 = vadd.f32 %v1050_v63, %v1042_v50  ;;  %v1067_v17 = vadd.f32 %v1051_v0, %v1043_v62  ;;  %v1068_v18 = vadd.f32 %v1052_v6, %v1044_v2  ;;  %v1073_v21 = vmul.f32 0.33333334, %v1065_v54  ;;  %v2273_v50 = vld [vmem:[%s629_s27 + $0x14] sm:$0x7] }
  0x33   : > { %1861 = vmatmul.msk.f32.gmra.mxu3 %vm685_vm4, %v1213_v1  ;;  %v1069_v19 = vadd.f32 %v1053_v14, %v1045_v3  ;;  %v1070_v20 = vadd.f32 %v1054_v15, %v1046_v4  ;;  %v1079_v23 = vmul.f32 0.33333334, %v1071_v46  ;;  %v1223_v9 = vsel %vm1161_vm10, %v1222_v5, %v1221_v7  ;;  %v2265_v46 = vld [vmem:[%s629_s27 + $0x10] sm:$0x7]  ;;  %v680_v5 = vld [vmem:[%s2594_s14] sm:$0x3f] }
  0x34   : > { %v1074_v22 = vmul.f32 0.33333334, %v1066_v16  ;;  %v1075_v12 = vmul.f32 0.33333334, %v1067_v17  ;;  %v1076_v10 = vmul.f32 0.33333334, %v1068_v18  ;;  %v1225_v29 = vsel %vm1163_vm11, %v1224_v8, %v1223_v9  ;;  %1851 = vmatpush.msk.msra.mxu1 %vm689_vm1, %v680_v5 }
  0x35   : > { %v1077_v24 = vmul.f32 0.33333334, %v1069_v19  ;;  %v1078_v11 = vmul.f32 0.33333334, %v1070_v20  ;;  %v1080_v25 = vmul.f32 0.33333334, %v1072_v49 }
  0x36   : > { %v1234_v26 = vrot.slane %v1074_v22, 7  ;;  %v1236_v27 = vrot.slane %v1075_v12, 6  ;;  %v1238_v13 = vrot.slane %v1076_v10, 5  ;;  %v1244_v33 = vrot.slane %v1079_v23, 2  ;;  %v1545_v19 = vld [vmem:[%s2590_s10 + $0x8] sm:$0x1] }
  0x37   : > { %v1240_v28 = vrot.slane %v1077_v24, 4  ;;  %v1242_v31 = vrot.slane %v1078_v11, 3  ;;  %v1246_v35 = vrot.slane %v1080_v25, 1  ;;  %v1090_v42 = vrot.slane %v2255_v40, 1  ;;  %v1544_v20 = vld [vmem:[%s2590_s10] sm:$0xff]  ;;  %1868 = vmatpush.msk.msrb.mxu1 %vm1555_vm13, %v1545_v19  ;;  %s1995_s27 = smov 48  }
  0x38   : > { %v1235_v30 = vsel %vm1147_vm5, %v1234_v26, %v1073_v21  ;;  %v1091_v45 = vrot.slane %v2257_v41, 1  ;;  %v1089_v47 = vrot.slane %v2260_v43, 1  ;;  %v1092_v48 = vrot.slane %v2262_v44, 1  ;;  %v753_v23 = vld [vmem:[%s2303_s26] sm:$0x3] }
  0x39   : > { %v1237_v32 = vsel %vm1150_vm6, %v1236_v27, %v1235_v30  ;;  %v1106_v49 = vadd.f32 %v1090_v42, %v2255_v40  ;;  %v1093_v51 = vrot.slane %v2265_v46, 1  ;;  %v1114_v53 = vrot.slane %v2255_v40, 2  ;;  %v756_v25 = vld [vmem:[%s2303_s26 + $0x6] sm:$0x3]  ;;  %v759_v26 = vld [vmem:[%s2303_s26 + $0xc] sm:$0x3]  ;;  %1574 = vmatpush.msrb.mxu1 %v1544_v20 }
  0x3a   : > { %v1239_v34 = vsel %vm1153_vm7, %v1238_v13, %v1237_v32  ;;  %v1107_v52 = vadd.f32 %v1091_v45, %v2257_v41  ;;  %v1115_v54 = vrot.slane %v2257_v41, 2  ;;  %v1094_v56 = vrot.slane %v2273_v50, 1  ;;  %v762_v27 = vld [vmem:[%s2303_s26 + $0x12] sm:$0x3]  ;;  %v768_v45 = vld [vmem:[%s2303_s26 + $0x1e] sm:$0x3] }
  0x3b   : > { %1862 = vmatmul.msk.f32.gmra.mxu3 %vm685_vm4, %v1225_v29  ;;  %v1241_v36 = vsel %vm1156_vm8, %v1240_v28, %v1239_v34  ;;  %v1105_v57 = vadd.f32 %v1089_v47, %v2260_v43  ;;  %v1108_v58 = vadd.f32 %v1092_v48, %v2262_v44  ;;  %v1113_v59 = vrot.slane %v2260_v43, 2  ;;  %v771_v48 = vld [vmem:[%s2303_s26 + $0x24] sm:$0x3]  ;;  %v732_v19 = vld [vmem:[%s2343_s20 + $0x6] sm:$0x3] }
  0x3c   : > { %v1243_v37 = vsel %vm1159_vm9, %v1242_v31, %v1241_v36  ;;  %v1095_v61 = vrot.slane %v2279_v55, 1  ;;  %v1109_v62 = vadd.f32 %v1093_v51, %v2265_v46  ;;  %v1116_v63 = vrot.slane %v2262_v44, 2  ;;  %v735_v20 = vld [vmem:[%s2343_s20 + $0xc] sm:$0x3] }
  0x3d   : > { %v1245_v38 = vsel %vm1161_vm10, %v1244_v33, %v1243_v37  ;;  %v1117_v0 = vrot.slane %v2265_v46, 2  ;;  %v1096_v1 = vrot.slane %v2287_v60, 1  ;;  %v1110_v2 = vadd.f32 %v1094_v56, %v2273_v50  ;;  %v765_v37 = vld [vmem:[%s2303_s26 + $0x18] sm:$0x3] }
  0x3e   : > { %v1247_v39 = vsel %vm1163_vm11, %v1246_v35, %v1245_v38  ;;  %v1118_v3 = vrot.slane %v2273_v50, 2  ;;  %v1129_v4 = vadd.f32 %v1113_v59, %v1105_v57  ;;  %v1111_v6 = vadd.f32 %v1095_v61, %v2279_v55 }
  0x3f   : > { %1864 = vmatmul.msk.f32.vlgmr.msrb.gmra.mxu0 %vm1498_vm12, %v1247_v39  ;;  %v1119_v14 = vrot.slane %v2279_v55, 2  ;;  %v1130_v15 = vadd.f32 %v1114_v53, %v1106_v49  ;;  %v1131_v7 = vadd.f32 %v1115_v54, %v1107_v52  ;;  %v1112_v8 = vadd.f32 %v1096_v1, %v2287_v60  ;;  %v774_v52 = vld [vmem:[%s2303_s26 + $0x2a] sm:$0x3] }
  0x40   : > { %v1120_v16 = vrot.slane %v2287_v60, 2  ;;  %v1132_v17 = vadd.f32 %v1116_v63, %v1108_v58  ;;  %v1133_v18 = vadd.f32 %v1117_v0, %v1109_v62  ;;  %v1134_v21 = vadd.f32 %v1118_v3, %v1110_v2 }
  0x41   : > { %v1135_v22 = vadd.f32 %v1119_v14, %v1111_v6  ;;  %v1137_v12 = vmul.f32 0.33333334, %v1129_v4  ;;  %v1138_v10 = vmul.f32 0.33333334, %v1130_v15  ;;  %v1139_v24 = vmul.f32 0.33333334, %v1131_v7 }
  0x42   : > { %v1136_v9 = vadd.f32 %v1120_v16, %v1112_v8  ;;  %v1140_v11 = vmul.f32 0.33333334, %v1132_v17  ;;  %v1141_v13 = vmul.f32 0.33333334, %v1133_v18  ;;  %v1142_v28 = vmul.f32 0.33333334, %v1134_v21 }
  0x43   : > { %v1143_v29 = vmul.f32 0.33333334, %v1135_v22  ;;  %v1322_v31 = vrot.slane %v1138_v10, 7  ;;  %v1324_v32 = vrot.slane %v1139_v24, 6  ;;  %v905_v49 = vrot.slane %v753_v23, 1 }
  0x44   : > { %v2329_v30 = vmul.f32 0.33333334, %v1136_v9  ;;  %v1326_v33 = vrot.slane %v1140_v11, 5  ;;  %v1328_v34 = vrot.slane %v1141_v13, 4  ;;  %v1330_v35 = vrot.slane %v1142_v28, 3 }
  0x45   : > { %v1332_v36 = vrot.slane %v1143_v29, 2  ;;  %v1323_v38 = vsel %vm1147_vm5, %v1322_v31, %v1137_v12  ;;  %v906_v53 = vrot.slane %v756_v25, 1  ;;  %v907_v54 = vrot.slane %v759_v26, 1  ;;  %v729_v18 = vld [vmem:[%s2343_s20] sm:$0x3] }
  0x46   : > { %v1334_v39 = vrot.slane %v2329_v30, 1  ;;  %v1325_v51 = vsel %vm1150_vm6, %v1324_v32, %v1323_v38  ;;  %v908_v56 = vrot.slane %v762_v27, 1  ;;  %v909_v58 = vrot.slane %v765_v37, 1  ;;  %v738_v9 = vld [vmem:[%s2343_s20 + $0x12] sm:$0x3] }
  0x47   : > { %v1327_v57 = vsel %vm1153_vm7, %v1326_v33, %v1325_v51  ;;  %v910_v61 = vrot.slane %v768_v45, 1  ;;  %v911_v62 = vrot.slane %v771_v48, 1  ;;  %v912_v0 = vrot.slane %v774_v52, 1  ;;  %v741_v10 = vld [vmem:[%s2343_s20 + $0x18] sm:$0x3] }
  0x48   : > { %v1329_v63 = vsel %vm1156_vm8, %v1328_v34, %v1327_v57  ;;  %v921_v2 = vadd.f32 %v905_v49, %v753_v23  ;;  %v922_v3 = vadd.f32 %v906_v53, %v756_v25  ;;  %v923_v5 = vadd.f32 %v907_v54, %v759_v26  ;;  %v747_v31 = vld [vmem:[%s2343_s20 + $0x24] sm:$0x3] }
  0x49   : > { %v1331_v4 = vsel %vm1159_vm9, %v1330_v35, %v1329_v63  ;;  %v924_v6 = vadd.f32 %v908_v56, %v762_v27  ;;  %v925_v15 = vadd.f32 %v909_v58, %v765_v37  ;;  %v926_v7 = vadd.f32 %v910_v61, %v768_v45  ;;  %v744_v27 = vld [vmem:[%s2343_s20 + $0x1e] sm:$0x3]  ;;  %v750_v37 = vld [vmem:[%s2343_s20 + $0x2a] sm:$0x3] }
  0x4a   : > { %v927_v8 = vadd.f32 %v911_v62, %v771_v48  ;;  %v928_v17 = vadd.f32 %v912_v0, %v774_v52  ;;  %v1333_v21 = vsel %vm1161_vm10, %v1332_v36, %v1331_v4  ;;  %v929_v22 = vmul.f32 0.5, %v921_v2 }
  0x4b   : > { %v930_v12 = vmul.f32 0.5, %v922_v3  ;;  %v931_v23 = vmul.f32 0.5, %v923_v5  ;;  %v932_v24 = vmul.f32 0.5, %v924_v6  ;;  %v933_v11 = vmul.f32 0.5, %v925_v15 }
  0x4c   : > { %v934_v25 = vmul.f32 0.5, %v926_v7  ;;  %v935_v26 = vmul.f32 0.5, %v927_v8  ;;  %v936_v13 = vmul.f32 0.5, %v928_v17  ;;  %v785_v32 = vrot.slane %v729_v18, 1 }
  0x4d   : > { %v1256_v28 = vrot.slane %v930_v12, 7  ;;  %v1258_v29 = vrot.slane %v931_v23, 6  ;;  %v1260_v33 = vrot.slane %v932_v24, 5  ;;  %v1262_v34 = vrot.slane %v933_v11, 4  ;;  %v760_v12 = vld [vmem:[%s2303_s26 + $0xe] sm:$0x3] }
  0x4e   : > { %v1264_v35 = vrot.slane %v934_v25, 3  ;;  %v1266_v36 = vrot.slane %v935_v26, 2  ;;  %v1268_v45 = vrot.slane %v936_v13, 1  ;;  %v786_v48 = vrot.slane %v732_v19, 1  ;;  %v763_v24 = vld [vmem:[%s2303_s26 + $0x14] sm:$0x3] }
  0x4f   : > { %v1257_v38 = vsel %vm1147_vm5, %v1256_v28, %v929_v22  ;;  %v787_v49 = vrot.slane %v735_v20, 1  ;;  %v788_v52 = vrot.slane %v738_v9, 1  ;;  %v789_v53 = vrot.slane %v741_v10, 1  ;;  %v754_v22 = vld [vmem:[%s2303_s26 + $0x2] sm:$0x3] }
  0x50   : > { %v1259_v51 = vsel %vm1150_vm6, %v1258_v29, %v1257_v38  ;;  %v790_v54 = vrot.slane %v744_v27, 1  ;;  %v791_v57 = vrot.slane %v747_v31, 1  ;;  %v792_v58 = vrot.slane %v750_v37, 1  ;;  %v766_v11 = vld [vmem:[%s2303_s26 + $0x1a] sm:$0x3] }
  0x51   : > { %v1261_v56 = vsel %vm1153_vm7, %v1260_v33, %v1259_v51  ;;  %v801_v61 = vadd.f32 %v785_v32, %v729_v18  ;;  %v802_v63 = vadd.f32 %v786_v48, %v732_v19  ;;  %v803_v0 = vadd.f32 %v787_v49, %v735_v20  ;;  %v757_v18 = vld [vmem:[%s2303_s26 + $0x8] sm:$0x3]  ;;  %v1926_v25 = vld [vmem:[%s2593_s13] ss:$0 sm:$0xff] }
  0x52   : > { %v1263_v62 = vsel %vm1156_vm8, %v1262_v34, %v1261_v56  ;;  %v804_v2 = vadd.f32 %v788_v52, %v738_v9  ;;  %v805_v4 = vadd.f32 %v789_v53, %v741_v10  ;;  %v806_v5 = vadd.f32 %v790_v54, %v744_v27  ;;  %v1402_v10 = vld [vmem:[%s2587_s7] sm:$0x1f]  ;;  %v772_v34 = vld [vmem:[%s2303_s26 + $0x26] sm:$0x3] }
  0x53   : > { %v1265_v3 = vsel %vm1159_vm9, %v1264_v35, %v1263_v62  ;;  %v807_v6 = vadd.f32 %v791_v57, %v747_v31  ;;  %v808_v7 = vadd.f32 %v792_v58, %v750_v37  ;;  %v809_v8 = vmul.f32 0.5, %v801_v61  ;;  %v769_v29 = vld [vmem:[%s2303_s26 + $0x20] sm:$0x3]  ;;  %1853 = vmatpush.msk.msra.mxu2 %vm1413_vm14, %v1402_v10 }
  0x54   : > { %v1267_v15 = vsel %vm1161_vm10, %v1266_v36, %v1265_v3  ;;  %v810_v17 = vmul.f32 0.5, %v802_v63  ;;  %v811_v20 = vmul.f32 0.5, %v803_v0  ;;  %v812_v23 = vmul.f32 0.5, %v804_v2 }
  0x55   : > { %v1269_v19 = vsel %vm1163_vm11, %v1268_v45, %v1267_v15  ;;  %v813_v9 = vmul.f32 0.5, %v805_v4  ;;  %v2378_v26 = vsel %vm1163_vm11, %v1334_v39, %v1333_v21  ;;  %v814_v27 = vmul.f32 0.5, %v806_v5  ;;  %v775_v39 = vld [vmem:[%s2303_s26 + $0x2c] sm:$0x3] }
  0x56   : > { %1865 = vmatmul.msk.f32.gmra.mxu0 %vm1498_vm12, %v1269_v19  ;;  %v815_v13 = vmul.f32 0.5, %v807_v6  ;;  %v1344_v28 = vrot.slane %v810_v17, 7  ;;  %v1346_v31 = vrot.slane %v811_v20, 6  ;;  %v1348_v32 = vrot.slane %v812_v23, 5  ;;  %v730_v19 = vld [vmem:[%s2343_s20 + $0x2] sm:$0x3] }
  0x57   : > { %v1350_v33 = vrot.slane %v813_v9, 4  ;;  %v2383_v35 = vmul.f32 0.5, %v808_v7  ;;  %v1352_v30 = vrot.slane %v814_v27, 3  ;;  %v945_v38 = vrot.slane %v754_v22, 1  ;;  %v733_v20 = vld [vmem:[%s2343_s20 + $0x8] sm:$0x3] }
  0x58   : > { %v1345_v36 = vsel %vm1147_vm5, %v1344_v28, %v809_v8  ;;  %v1354_v37 = vrot.slane %v815_v13, 2  ;;  %v946_v45 = vrot.slane %v757_v18, 1  ;;  %v947_v48 = vrot.slane %v760_v12, 1 }
  0x59   : > { %v1347_v21 = vsel %vm1150_vm6, %v1346_v31, %v1345_v36  ;;  %v948_v51 = vrot.slane %v763_v24, 1  ;;  %v949_v52 = vrot.slane %v766_v11, 1  ;;  %v950_v53 = vrot.slane %v769_v29, 1 }
  0x5a   : > { %v1349_v49 = vsel %vm1153_vm7, %v1348_v32, %v1347_v21  ;;  %v951_v57 = vrot.slane %v772_v34, 1  ;;  %v952_v58 = vrot.slane %v775_v39, 1  ;;  %v961_v61 = vadd.f32 %v945_v38, %v754_v22  ;;  %v1145_v22 = vld [vmem:[%s614_s12] sm:$0xff]  ;;  %v751_v21 = vld [vmem:[%s2343_s20 + $0x2c] sm:$0x3]  ;;  %s1837_s12 = sshll.u32 %s604_s30, 3 }
  0x5b   : > { %v1351_v56 = vsel %vm1156_vm8, %v1350_v33, %v1349_v49  ;;  %v962_v0 = vadd.f32 %v946_v45, %v757_v18  ;;  %v963_v2 = vadd.f32 %v947_v48, %v760_v12  ;;  %v1356_v3 = vrot.slane %v2383_v35, 1  ;;  %v736_v18 = vld [vmem:[%s2343_s20 + $0xe] sm:$0x3]  ;;  %1854 = vmatmul.msk.f32.vlgmr.msra.gmra.mxu2 %vm1403_vm0, %v1145_v22 }
  0x5c   : > { %v1353_v63 = vsel %vm1159_vm9, %v1352_v30, %v1351_v56  ;;  %v964_v4 = vadd.f32 %v948_v51, %v763_v24  ;;  %v965_v5 = vadd.f32 %v949_v52, %v766_v11  ;;  %v966_v6 = vadd.f32 %v950_v53, %v769_v29  ;;  %v739_v24 = vld [vmem:[%s2343_s20 + $0x14] sm:$0x3]  ;;  %v745_v29 = vld [vmem:[%s2343_s20 + $0x20] sm:$0x3] }
  0x5d   : > { %v2397_v7 = vsel %vm1161_vm10, %v1354_v37, %v1353_v63  ;;  %v967_v8 = vadd.f32 %v951_v57, %v772_v34  ;;  %v968_v17 = vadd.f32 %v952_v58, %v775_v39  ;;  %v969_v12 = vmul.f32 0.5, %v961_v61  ;;  %v748_v34 = vld [vmem:[%s2343_s20 + $0x26] sm:$0x3] }
  0x5e   : > { %v970_v23 = vmul.f32 0.5, %v962_v0  ;;  %v971_v9 = vmul.f32 0.5, %v963_v2  ;;  %v972_v10 = vmul.f32 0.5, %v964_v4  ;;  %v973_v11 = vmul.f32 0.5, %v965_v5 }
  0x5f   : > { %v974_v27 = vmul.f32 0.5, %v966_v6  ;;  %v975_v13 = vmul.f32 0.5, %v967_v8  ;;  %v976_v28 = vmul.f32 0.5, %v968_v17  ;;  %v825_v45 = vrot.slane %v730_v19, 1 }
  0x60   : > { %v1278_v31 = vrot.slane %v970_v23, 7  ;;  %v1280_v32 = vrot.slane %v971_v9, 6  ;;  %v1282_v33 = vrot.slane %v972_v10, 5  ;;  %v1284_v36 = vrot.slane %v973_v11, 4  ;;  %v764_v11 = vld [vmem:[%s2303_s26 + $0x16] sm:$0x3] }
  0x61   : > { %v1286_v30 = vrot.slane %v974_v27, 3  ;;  %v1288_v37 = vrot.slane %v975_v13, 2  ;;  %v1290_v39 = vrot.slane %v976_v28, 1  ;;  %v826_v48 = vrot.slane %v733_v20, 1  ;;  %v767_v27 = vld [vmem:[%s2303_s26 + $0x1c] sm:$0x3] }
  0x62   : > { %v1279_v38 = vsel %vm1147_vm5, %v1278_v31, %v969_v12  ;;  %v827_v49 = vrot.slane %v736_v18, 1  ;;  %v828_v52 = vrot.slane %v739_v24, 1  ;;  %v831_v57 = vrot.slane %v748_v34, 1  ;;  %v755_v12 = vld [vmem:[%s2303_s26 + $0x4] sm:$0x3] }
  0x63   : > { %v1281_v51 = vsel %vm1150_vm6, %v1280_v32, %v1279_v38  ;;  %v832_v58 = vrot.slane %v751_v21, 1  ;;  %v841_v61 = vadd.f32 %v825_v45, %v730_v19  ;;  %v842_v63 = vadd.f32 %v826_v48, %v733_v20  ;;  %v758_v20 = vld [vmem:[%s2303_s26 + $0xa] sm:$0x3]  ;;  %v770_v31 = vld [vmem:[%s2303_s26 + $0x22] sm:$0x3] }
  0x64   : > { %v1283_v56 = vsel %vm1153_vm7, %v1282_v33, %v1281_v51  ;;  %v843_v0 = vadd.f32 %v827_v49, %v736_v18  ;;  %v844_v2 = vadd.f32 %v828_v52, %v739_v24  ;;  %v761_v18 = vld [vmem:[%s2303_s26 + $0x10] sm:$0x3]  ;;  %v1357_v32 = vsel %vm1163_vm11, %v1356_v3, %v2397_v7  ;;  %v776_v45 = vld [vmem:[%s2303_s26 + $0x2e] sm:$0x3] }
  0x65   : > { %v848_v17 = vadd.f32 %v832_v58, %v751_v21  ;;  %v849_v22 = vmul.f32 0.5, %v841_v61  ;;  %v850_v19 = vmul.f32 0.5, %v842_v63  ;;  %v985_v49 = vrot.slane %v755_v12, 1 }
  0x66   : > { %v851_v9 = vmul.f32 0.5, %v843_v0  ;;  %v852_v10 = vmul.f32 0.5, %v844_v2  ;;  %v986_v51 = vrot.slane %v758_v20, 1  ;;  %v987_v52 = vrot.slane %v761_v18, 1 }
  0x67   : > { %v856_v28 = vmul.f32 0.5, %v848_v17  ;;  %v988_v35 = vrot.slane %v764_v11, 1  ;;  %v990_v3 = vrot.slane %v770_v31, 1  ;;  %v1001_v58 = vadd.f32 %v985_v49, %v755_v12 }
  0x68   : > { %v1368_v33 = vrot.slane %v851_v9, 6  ;;  %v1003_v63 = vadd.f32 %v987_v52, %v761_v18  ;;  %v1155_v49 = vrot.slane %v2265_v46, 4  ;;  %vm1632_vm1 = vcmask 64512  }
  0x69   : > { %v1378_v38 = vrot.slane %v856_v28, 1  ;;  %v1004_v0 = vadd.f32 %v988_v35, %v764_v11  ;;  %v1009_v17 = vmul.f32 0.5, %v1001_v58  ;;  %v752_v35 = vld [vmem:[%s2343_s20 + $0x2e] sm:$0x3]  ;;  %vm1634_vm2 = vcmask 130048  }
  0x6b   : > { %v1012_v12 = vmul.f32 0.5, %v1004_v0 }
  0xa0   : > { %v676_v54 = vpop.f32.mrf.mxu0 }
  0xa1   : > { %v677_v62 = vadd.f32 %v1926_v25, %v676_v54  ;;  %v742_v25 = vld [vmem:[%s2343_s20 + $0x1a] sm:$0x3]  ;;  %v830_v54 = vrot.slane %v745_v29, 1 }
  0xa2   : > { %v829_v53 = vrot.slane %v742_v25, 1 }
  0xa3   : > { %v679_v15 = vmax.f32 %v677_v62, 0.0  ;;  %v1285_v62 = vsel %vm1156_vm8, %v1284_v36, %v1283_v56  ;;  %v846_v6 = vadd.f32 %v830_v54, %v745_v29  ;;  %v1366_v29 = vrot.slane %v850_v19, 7 }
  0xa4   : > { %v1287_v4 = vsel %vm1159_vm9, %v1286_v30, %v1285_v62  ;;  %v845_v5 = vadd.f32 %v829_v53, %v742_v25  ;;  %v2421_v25 = vpop.f32.mrf.mxu3  ;;  %v773_v30 = vld [vmem:[%s2303_s26 + $0x28] sm:$0x3]  ;;  %v989_v54 = vrot.slane %v767_v27, 1  ;;  %v1002_v62 = vadd.f32 %v986_v51, %v758_v20  ;;  %v731_v20 = vld [vmem:[%s2343_s20 + $0x4] sm:$0x3]  ;;  %s1993_s26 = smov 16  }
  0xa5   : > { %1852 = vmatmul.msk.f32.vlgmr.msra.gmra.mxu1 %vm685_vm4, %v679_v15  ;;  %v847_v15 = vadd.f32 %v831_v57, %v748_v34  ;;  %v1289_v8 = vsel %vm1161_vm10, %v1288_v37, %v1287_v4  ;;  %v1370_v34 = vrot.slane %v852_v10, 5  ;;  %v1367_v37 = vsel %vm1147_vm5, %v1366_v29, %v849_v22  ;;  %v734_v10 = vld [vmem:[%s2343_s20 + $0xa] sm:$0x3]  ;;  %v749_v51 = vld [vmem:[%s2343_s20 + $0x28] sm:$0x3] }
  0xa6   : > { %v1291_v23 = vsel %vm1163_vm11, %v1290_v39, %v1289_v8  ;;  %v853_v24 = vmul.f32 0.5, %v845_v5  ;;  %v1369_v48 = vsel %vm1150_vm6, %v1368_v33, %v1367_v37  ;;  %v991_v56 = vrot.slane %v773_v30, 1  ;;  %v740_v33 = vld [vmem:[%s2343_s20 + $0x16] sm:$0x3] }
  0xa7   : > { %1866 = vmatmul.msk.f32.gmra.mxu0 %vm1498_vm12, %v1291_v23  ;;  %v855_v13 = vmul.f32 0.5, %v847_v15  ;;  %v1371_v53 = vsel %vm1153_vm7, %v1370_v34, %v1369_v48  ;;  %v992_v57 = vrot.slane %v776_v45, 1  ;;  %v1005_v4 = vadd.f32 %v989_v54, %v767_v27 }
  0xa8   : > { %v1372_v36 = vrot.slane %v853_v24, 4  ;;  %v1006_v5 = vadd.f32 %v990_v3, %v770_v31  ;;  %v1010_v22 = vmul.f32 0.5, %v1002_v62  ;;  %v1011_v19 = vmul.f32 0.5, %v1003_v63 }
  0xa9   : > { %v1376_v21 = vrot.slane %v855_v13, 2  ;;  %v1008_v8 = vadd.f32 %v992_v57, %v776_v45  ;;  %v1013_v23 = vmul.f32 0.5, %v1005_v4  ;;  %v737_v13 = vld [vmem:[%s2343_s20 + $0x10] sm:$0x3]  ;;  %v1304_v29 = vrot.slane %v1012_v12, 5 }
  0xaa   : > { %v1373_v7 = vsel %vm1156_vm8, %v1372_v36, %v1371_v53  ;;  %v1014_v9 = vmul.f32 0.5, %v1006_v5  ;;  %v1300_v27 = vrot.slane %v1010_v22, 7  ;;  %v1302_v28 = vrot.slane %v1011_v19, 6 }
  0xab   : > { %v1016_v11 = vmul.f32 0.5, %v1008_v8  ;;  %v1306_v31 = vrot.slane %v1013_v23, 4  ;;  %v1149_v45 = vrot.slane %v2257_v41, 6  ;;  %v1152_v48 = vrot.slane %v2262_v44, 5 }
  0xac   : > { %v1301_v34 = vsel %vm1147_vm5, %v1300_v27, %v1009_v17  ;;  %v1158_v53 = vrot.slane %v2273_v50, 3  ;;  %v865_v54 = vrot.slane %v731_v20, 1  ;;  %v866_v3 = vrot.slane %v734_v10, 1 }
  0xad   : > { %1869 = vmatmul.msk.f32.vlgmr.msrb.gmra.mxu1 %vm1546_vm15, %v2378_v26  ;;  %v854_v26 = vmul.f32 0.5, %v846_v6  ;;  %v1007_v6 = vadd.f32 %v991_v56, %v773_v30  ;;  %v1312_v30 = vrot.slane %v1016_v11, 1  ;;  %v867_v57 = vrot.slane %v737_v13, 1 }
  0xae   : > { %v2443_v18 = vpop.f32.mrf.mxu3  ;;  %v868_v58 = vrot.slane %v740_v33, 1  ;;  %v871_v5 = vrot.slane %v749_v51, 1  ;;  %v881_v17 = vadd.f32 %v865_v54, %v731_v20  ;;  %v882_v22 = vadd.f32 %v866_v3, %v734_v10 }
  0xaf   : > { %v1374_v39 = vrot.slane %v854_v26, 3  ;;  %v1015_v24 = vmul.f32 0.5, %v1007_v6  ;;  %v1146_v26 = vrot.slane %v2255_v40, 7  ;;  %v872_v6 = vrot.slane %v752_v35, 1 }
  0xb0   : > { %v883_v12 = vadd.f32 %v867_v57, %v737_v13  ;;  %v884_v23 = vadd.f32 %v868_v58, %v740_v33  ;;  %v889_v20 = vmul.f32 0.5, %v881_v17  ;;  %v890_v10 = vmul.f32 0.5, %v882_v22 }
  0xb1   : > { %v1375_v61 = vsel %vm1159_vm9, %v1374_v39, %v1373_v7  ;;  %v1310_v36 = vrot.slane %v1015_v24, 2  ;;  %v1148_v37 = vsel %vm1147_vm5, %v1146_v26, %v2260_v43  ;;  %v743_v39 = vld [vmem:[%s2343_s20 + $0x1c] sm:$0x3]  ;;  %v887_v26 = vadd.f32 %v871_v5, %v749_v51 }
  0xb2   : > { %v1377_v2 = vsel %vm1161_vm10, %v1376_v21, %v1375_v61  ;;  %v746_v21 = vld [vmem:[%s2343_s20 + $0x22] sm:$0x3]  ;;  %v1151_v56 = vsel %vm1150_vm6, %v1149_v45, %v1148_v37  ;;  %v869_v63 = vrot.slane %v743_v39, 1  ;;  %v1388_v33 = vrot.slane %v890_v10, 7  ;;  %s1997_s20 = smov 28  }
  0xb3   : > { %v1379_v15 = vsel %vm1163_vm11, %v1378_v38, %v1377_v2  ;;  %v1303_v38 = vsel %vm1150_vm6, %v1302_v28, %v1301_v34  ;;  %v1154_v62 = vsel %vm1153_vm7, %v1152_v48, %v1151_v56  ;;  %v870_v0 = vrot.slane %v746_v21, 1 }
  0xb4   : > { %v1305_v52 = vsel %vm1153_vm7, %v1304_v29, %v1303_v38  ;;  %v1157_v4 = vsel %vm1156_vm8, %v1155_v49, %v1154_v62  ;;  %v888_v28 = vadd.f32 %v872_v6, %v752_v35  ;;  %v891_v29 = vmul.f32 0.5, %v883_v12 }
  0xb5   : > { %1870 = vmatmul.msk.f32.gmra.mxu1 %vm1546_vm15, %v1357_v32  ;;  %v1308_v32 = vrot.slane %v1014_v9, 3  ;;  %v1307_v7 = vsel %vm1156_vm8, %v1306_v31, %v1305_v52  ;;  %v1160_v8 = vsel %vm1159_vm9, %v1158_v53, %v1157_v4  ;;  %v885_v9 = vadd.f32 %v869_v63, %v743_v39 }
  0xb6   : > { %v1162_v19 = vsel %vm1161_vm10, %v1119_v14, %v1160_v8  ;;  %v1486_v24 = vpop.f32.mrf.mxu3  ;;  %v886_v27 = vadd.f32 %v870_v0, %v746_v21  ;;  %v892_v31 = vmul.f32 0.5, %v884_v23  ;;  %v895_v14 = vmul.f32 0.5, %v887_v26 }
  0xb7   : > { %v1309_v61 = vsel %vm1159_vm9, %v1308_v32, %v1307_v7  ;;  %v1164_v11 = vsel %vm1163_vm11, %v1096_v1, %v1162_v19  ;;  %v893_v32 = vmul.f32 0.5, %v885_v9  ;;  %v896_v13 = vmul.f32 0.5, %v888_v28 }
  0xb8   : > { %v1311_v2 = vsel %vm1161_vm10, %v1310_v36, %v1309_v61  ;;  %1855 = vmatmul.msk.f32.gmra.mxu2 %vm1403_vm0, %v1164_v11  ;;  %v894_v34 = vmul.f32 0.5, %v886_v27  ;;  %v1390_v36 = vrot.slane %v891_v29, 6  ;;  %v1493_v37 = vmax.f32 %v2443_v18, 0.0 }
  0xb9   : > { %v1394_v39 = vrot.slane %v893_v32, 4  ;;  %v1398_v21 = vrot.slane %v895_v14, 2  ;;  %v1400_v38 = vrot.slane %v896_v13, 1  ;;  %v1389_v48 = vsel %vm1147_vm5, %v1388_v33, %v889_v20 }
  0xba   : > { %v1396_v1 = vrot.slane %v894_v34, 3  ;;  %v1165_v49 = vsel %vm1147_vm5, %v2255_v40, %v1089_v47  ;;  %v1166_v51 = vrot.slane %v2257_v41, 7  ;;  %v1168_v52 = vrot.slane %v2262_v44, 6 }
  0xbb   : > { %v1391_v53 = vsel %vm1150_vm6, %v1390_v36, %v1389_v48  ;;  %v1170_v18 = vrot.slane %v2265_v46, 5  ;;  %v1172_v35 = vrot.slane %v2273_v50, 4  ;;  %v1174_v54 = vrot.slane %v2279_v55, 3 }
  0xbc   : > { %v1528_v45 = vpop.f32.mrf.mxu0  ;;  %v1167_v7 = vsel %vm1150_vm6, %v1166_v51, %v1165_v49  ;;  %v1494_v56 = vmax.f32 %v1486_v24, 0.0  ;;  %v1177_v61 = vsel %vm1147_vm5, %v1090_v42, %v1113_v59  ;;  %v1179_v62 = vrot.slane %v2262_v44, 7 }
  0xbd   : > { %1871 = vmatmul.msk.f32.gmra.mxu1 %vm1546_vm15, %v1379_v15  ;;  %v1313_v15 = vsel %vm1163_vm11, %v1312_v30, %v1311_v2  ;;  %v1392_v30 = vrot.slane %v892_v31, 5  ;;  %v1540_v57 = vmax.f32 %v1528_v45, 0.0  ;;  %v1169_v58 = vsel %vm1153_vm7, %v1168_v52, %v1167_v7  ;;  %v1651_v7 = vld [vmem:[%s2591_s11 + $0x28] sm:$0xff] }
  0xbe   : > { %1867 = vmatmul.msk.f32.gmra.mxu0 %vm1498_vm12, %v1313_v15  ;;  %v1171_v0 = vsel %vm1156_vm8, %v1170_v18, %v1169_v58  ;;  %v1595_v2 = vadd.f32 %v1494_v56, %v1493_v37  ;;  %v1178_v4 = vsel %vm1150_vm6, %v2257_v41, %v1177_v61  ;;  %v1489_v5 = vpop.f32.mrf.mxu3  ;;  %v1181_v42 = vrot.slane %v2265_v46, 6  ;;  %v1927_v18 = vld [vmem:[%s2595_s15] ss:$0 sm:$0xff]  ;;  %v1647_v58 = vld [vmem:[%s2591_s11 + $0x8] sm:$0xff] }
  0xbf   : > { %v1393_v3 = vsel %vm1153_vm7, %v1392_v30, %v1391_v53  ;;  %1605 = vrot.lane.b32.xlu0 %v1540_v57, %s1992_s19  ;;  %v1173_v43 = vsel %vm1159_vm9, %v1172_v35, %v1171_v0  ;;  %v1180_v40 = vsel %vm1153_vm7, %v1179_v62, %v1178_v4  ;;  %v1183_v15 = vrot.slane %v2273_v50, 5  ;;  %v1650_v56 = vld [vmem:[%s2591_s11 + $0x20] sm:$0xff]  ;;  %v1649_v57 = vld [vmem:[%s2591_s11 + $0x18] sm:$0xff] }
  0xc0   : > { %v1395_v47 = vsel %vm1156_vm8, %v1394_v39, %v1393_v3  ;;  %v1175_v59 = vsel %vm1161_vm10, %v1174_v54, %v1173_v43  ;;  %v1185_v8 = vrot.slane %v2279_v55, 4  ;;  %v1182_v17 = vsel %vm1156_vm8, %v1181_v42, %v1180_v40  ;;  %v1646_v61 = vld [vmem:[%s2591_s11] sm:$0xff] }
  0xc1   : > { %v1397_v63 = vsel %vm1159_vm9, %v1396_v1, %v1395_v47  ;;  %v1176_v41 = vsel %vm1163_vm11, %v1120_v16, %v1175_v59  ;;  %v1495_v22 = vmax.f32 %v1489_v5, 0.0  ;;  %v1184_v46 = vsel %vm1159_vm9, %v1183_v15, %v1182_v17  ;;  %v1648_v47 = vld [vmem:[%s2591_s11 + $0x10] sm:$0xff] }
  0xc2   : > { %v1399_v6 = vsel %vm1161_vm10, %v1398_v21, %v1397_v63  ;;  %1856 = vmatmul.msk.f32.gmra.mxu2 %vm1403_vm0, %v1176_v41  ;;  %v1187_v19 = vrot.slane %v2287_v60, 3  ;;  %v1186_v50 = vsel %vm1161_vm10, %v1185_v8, %v1184_v46  ;;  %v1492_v49 = vmax.f32 %v2421_v25, 0.0  ;;  %v1652_v25 = vld [vmem:[%s2591_s11 + $0x30] sm:$0xff] }
  0xc3   : > { %v1401_v44 = vsel %vm1163_vm11, %v1400_v38, %v1399_v6  ;;  %v1596_v12 = vadd.f32 %v1595_v2, %v1495_v22  ;;  %1666 = vmatpush.msrb.mxu2 %v1652_v25  ;;  %vm1638_vm4 = vcmask 228352   ;;  %vm1640_vm5 = vcmask 277504  }
  0xc4   : > { %v1188_v55 = vsel %vm1163_vm11, %v1187_v19, %v1186_v50  ;;  %vm1642_vm6 = vcmask 326656   ;;  %vm1644_vm7 = vcmask 392192   ;;  %vm1653_vm8 = vcmask 457728  }
  0xc5   : > { %1872 = vmatmul.msk.f32.gmra.mxu1 %vm1546_vm15, %v1401_v44  ;;  %v1597_v23 = vmul.f32 0.33333334, %v1596_v12  ;;  %1667 = vmatpush.msrb.mxu2 %v1651_v7  ;;  %vm1682_vm9 = vcmask 523264   ;;  %vm1684_vm10 = vcmask 588800  }
  0xc7   : > { %1609 = vrot.lane.b32.xlu0 %v1597_v23, %s1993_s26  ;;  %1668 = vmatpush.msrb.mxu2 %v1650_v56 }
  0xc9   : > { %1669 = vmatpush.msrb.mxu2 %v1649_v57 }
  0xca   : > { %1857 = vmatmul.msk.f32.gmra.mxu2 %vm1403_vm0, %v1188_v55 }
  0xcb   : > { %1670 = vmatpush.msrb.mxu2 %v1648_v47 }
  0xcd   : > { %1671 = vmatpush.msrb.mxu2 %v1647_v58 }
  0xcf   : > { %1672 = vmatpush.msrb.mxu2 %v1646_v61 }
  0xd3   : > { %v1531_v11 = vpop.f32.mrf.mxu0 }
  0xd4   : > { %v1541_v28 = vmax.f32 %v1531_v11, 0.0 }
  0xde   : > { %v1434_v10 = vpop.f32.mrf.mxu2 }
  0xdf   : > { %v1446_v63 = vmax.f32 %v1434_v10, 0.0 }
 0x122   : > { %v710_v16 = vpop.f32.mrf.mxu1 }
 0x123   : > { %v711_v3 = vadd.f32 %v1927_v18, %v710_v16 }
 0x124   : > { %v1534_v27 = vpop.f32.mrf.mxu0 }
 0x125   : > { %v1542_v60 = vmax.f32 %v1534_v27, 0.0 }
 0x127   : > { %v1598_v20 = vadd.f32 %v1542_v60, %v1541_v28 }
 0x12a   : > { %v1576_v9 = vpop.f32.mrf.mxu1 }
 0x12b   : > { %v1588_v24 = vmax.f32 %v1576_v9, 0.0 }
 0x12d   : > { %1621 = vrot.lane.b32.xlu2 %v1588_v24, %s1994_s21  ;;  %s1697_s21 = scalar_lea.hbm %s2596_s16, %s2136_s28 }
 0x131   : > { %v1606_v62 = vpop.permute.xlu0 %1605 }
 0x132   : > { %v1579_v26 = vpop.f32.mrf.mxu1  ;;  %v1633_v5 = vsel %vm1632_vm1, %v1446_v63, %v1606_v62 }
 0x133   : > { %v1589_v36 = vmax.f32 %v1579_v26, 0.0 }
 0x139   : > { %v1610_v4 = vpop.permute.xlu0 %1609 }
 0x13a   : > { %v1582_v32 = vpop.f32.mrf.mxu1  ;;  %v1635_v6 = vsel %vm1634_vm2, %v1633_v5, %v1610_v4 }
 0x13b   : > { %v1537_v29 = vpop.f32.mrf.mxu0  ;;  %v1590_v13 = vmax.f32 %v1582_v32, 0.0  ;;  %v1437_v33 = vpop.f32.mrf.mxu2 }
 0x13c   : > { %v1543_v31 = vmax.f32 %v1537_v29, 0.0  ;;  %v1447_v45 = vmax.f32 %v1437_v33, 0.0 }
 0x13d   : > { %v1601_v37 = vadd.f32 %v1590_v13, %v1589_v36 }
 0x13e   : > { %v1599_v34 = vadd.f32 %v1598_v20, %v1543_v31 }
 0x140   : > { %v1600_v14 = vmul.f32 0.33333334, %v1599_v34 }
 0x142   : > { %1629 = vrot.lane.b32.xlu0 %v1600_v14, %s1995_s27  ;;  %v1585_v30 = vpop.f32.mrf.mxu1  ;;  %s606_s27 = scalar_lea.vmem [#allocation2], %s1837_s12 }
 0x143   : > { %v1591_v39 = vmax.f32 %v1585_v30, 0.0 }
 0x145   : > { %v1602_v1 = vadd.f32 %v1601_v37, %v1591_v39  ;;  %v1440_v38 = vpop.f32.mrf.mxu2 }
 0x146   : > { %v1448_v48 = vmax.f32 %v1440_v38, 0.0 }
 0x147   : > { %v1603_v21 = vmul.f32 0.33333334, %v1602_v1 }
 0x148   : > { %v1592_v51 = vadd.f32 %v1448_v48, %v1447_v45 }
 0x149   : > { %1613 = vrot.lane.b32.xlu1 %v1603_v21, %s1996_s18  ;;  %s1699_s18 = sshll.u32 %s606_s27, 4  ;;  %s1700_s18 = int_to_ptr.vmem [resolvable:$true] %s1699_s18 }
 0x14d   : > { %v1443_v52 = vpop.f32.mrf.mxu2 }
 0x14e   : > { %v1449_v53 = vmax.f32 %v1443_v52, 0.0 }
 0x150   : > { %v1593_v35 = vadd.f32 %v1592_v51, %v1449_v53 }
 0x151   : > { %1617 = vrot.lane.b32.xlu1 %v1492_v49, %s1997_s20  ;;  %s1701_s20 = sshll.u32 %s1697_s21, 4  ;;  %s1702_s20 = int_to_ptr.hbm [resolvable:$true] %s1701_s20 }
 0x152   : > { %v1594_v54 = vmul.f32 0.33333334, %v1593_v35  ;;  %s1942_s17 = sshra.s32 %s1702_s20, 4  ;;  %s1943_s17 = int_to_ptr.hbm [resolvable:$true] %s1942_s17 }
 0x153   : > { %p1949_p1 = scmp.lt.s32.totalorder %s1943_s17, %s2596_s16 }
 0x154   : > { %1625 = vrot.lane.b32.xlu2 %v1594_v54, %s1998_s29  ;;  %s1944_s29 = scalar_lea.hbm %s1943_s17, 8 }
 0x155   : > { %p1945_p12 = scmp.ne.s32.totalorder %s1943_s17, %s1944_s29  ;;  %p1950_p2 = scmp.lt.s32.totalorder %s1948_s23, %s1944_s29 }
 0x157   : > { %p1946_p13 = pnand %p1945_p12, %p2120_p5  ;;  %p1951_p3 = por %p1950_p2, %p1949_p1 }
 0x159   : > { %1679 = vrot.lane.b32.xlu1 %v711_v3, %s1999_s9  ;;  %p1947_p0 = pneg %p1946_p13 }
 0x15b   : > { %p1952_p4 = pnand %p1951_p3, %p1947_p0 }
 0x187   : > { %v1622_v2 = vpop.permute.xlu2 %1621 }
 0x1ae   : > { %v1626_v44 = vpop.permute.xlu2 %1625 }
 0x1b4   : > { %v1630_v15 = vpop.permute.xlu0 %1629 }
 0x1bb   : > { %v1614_v0 = vpop.permute.xlu1 %1613 }
 0x1bc   : > { %v1637_v43 = vsel %vm1636_vm3, %v1635_v6, %v1614_v0 }
 0x1c3   : > { %v1618_v40 = vpop.permute.xlu1 %1617 }
 0x1c4   : > { %v1639_v42 = vsel %vm1638_vm4, %v1637_v43, %v1618_v40 }
 0x1c5   : > { %v1641_v59 = vsel %vm1640_vm5, %v1639_v42, %v1622_v2 }
 0x1c6   : > { %v1643_v8 = vsel %vm1642_vm6, %v1641_v59, %v1626_v44 }
 0x1c7   : > { %v1645_v41 = vsel %vm1644_vm7, %v1643_v8, %v1630_v15 }
 0x1c8   : > { %1873 = vmatmul.msk.f32.vlgmr.msrb.gmra.mxu2 %vm1653_vm8, %v1645_v41 }
 0x1cb   : > { %v1680_v46 = vpop.permute.xlu1 %1679 }
 0x24b   : > { %v1674_v17 = vpop.f32.mrf.mxu2 }
 0x24c   : > { %v1677_v22 = vmax.f32 %v1674_v17, 0.0 }
 0x24e   : > { %v1683_v19 = vsel %vm1682_vm9, %v1677_v22, %v1680_v46 }
 0x24f   : > { %1685 = vst.msk [vmem:[%s606_s27] sm:$0xff] %vm1684_vm10, %v1683_v19 }
 0x250   : > { %1955 = shalt.err (!%p1952_p4)
}
 0x251   : > { %1879 = dma.vmem_to_hbm [thread:$0]  (%p2120_p5), %s1700_s18, 128, %s1702_s20, %s1687_s25  }
 0x252 PF: > { %s2615_s30 = sld [smem:[#allocation5_spill]]  ;;  %p1885_p7 = scmp.ge.s32.totalorder %s1990_s24, 2 }
 0x254   : > { %p1882_p8 = pnand %p1885_p7, %p2124_p6 }
 0x256   : > { %p1883_p9 = pneg %p1882_p8 }
 0x258   : > { %s1713_s21 = sand.u32 1, %s2615_s30  }
 0x259   : > { %s1714_s27 = scalar_lea.sflag [#allocation3], %s1713_s21 }
 0x25a   : > { %1973 = dma.done.wait (%p1883_p9), %s1714_s27, 128  }
 0x25b   : > { %1975 = vsyncadd (%p1883_p9), %s1714_s27, 4294967168  ;;  %s2617_s24 = sld [smem:[#allocation7_spill]]  ;;  %s2620_s21 = smov %s1982_s22 }
 0x25c   : > { %s2618_s17 = sld [smem:[#allocation6_spill]] }
 0x25d   : > { %s2619_s23 = sld [smem:[#allocation8_spill]] }
 0x261   : > { %p26_p10 = scmp.ge.s32.totalorder %s2617_s24, 4  }
 0x262   : > { %s2621_s22 = smov %s2618_s17 }
 0x263   :  { %28 = sbr.rel (!%p26_p10) target bundleno = 7 (0x7), region = 137 }
 0x268   :  { %1720 = vsyncpa [#allocation3], 1 }
 0x269   :  { %1722 = vsyncpa [#allocation3 + $0x1], 1 }

</bundles_post_ra>
